<compile_context>
chip_gen: v5e
topology: v5e:2x2
jax: 0.10.0
libtpu: 0.0.40
codegen_flags: <defaults>
</compile_context>

<pallas_src>
import functools
import math

import jax
import jax.numpy as jnp
from jax.experimental import pallas as pl
from jax.experimental.pallas import tpu as pltpu  # noqa: F401 (TPU backend)


CFG = dict(
    vocab=100, hidden=32, n_heads=4, n_layers=2, intermediate=64,
    max_pos=16, type_vocab=2, n_classes=3,
)


# ----------------------------- fused Pallas kernel ------------------------------

def _fused_bert_kernel(
    x0_ref, mask_ref, embg_ref, embb_ref,
    wqkv_ref, bqkv_ref, wo_ref, bo_ref, ln1g_ref, ln1b_ref,
    wi_ref, bi_ref, wo2_ref, bo2_ref, ln2g_ref, ln2b_ref,
    poolw_ref, poolb_ref, clsw_ref, clsb_ref,
    out_ref,
    *, B, S, n_heads, head_dim, n_layers, eps, scale,
):
    H = n_heads * head_dim

    def layernorm(x, g, b):
        mu = jnp.mean(x, axis=-1, keepdims=True)
        xc = x - mu
        var = jnp.mean(xc * xc, axis=-1, keepdims=True)
        return xc * jax.lax.rsqrt(var + eps) * g + b

    def gelu(y):
        # tanh-approx GELU (BERT "gelu_new" style)
        return 0.5 * y * (1.0 + jnp.tanh(
            0.7978845608028654 * (y + 0.044715 * y * y * y)))

    # --- embedding LayerNorm (no residual, no zeros tensor) ---
    x = layernorm(x0_ref[...], embg_ref[...], embb_ref[...])     # (B*S, H)
    addmask = mask_ref[...]                                      # (B, S), additive

    # --- encoder layers: static unroll over the 2 layers, weights in VMEM ---
    for l in range(n_layers):
        # fused QKV projection: one (B*S, H) @ (H, 3H) matmul
        qkv = jnp.dot(x, wqkv_ref[l],
                      preferred_element_type=jnp.float32) + bqkv_ref[l]
        q = qkv[:, 0:H]
        k = qkv[:, H:2 * H]
        v = qkv[:, 2 * H:3 * H]

        # attention: static unroll over (batch, head); everything stays in vregs
        ctx_rows = []
        for b in range(B):
            m_b = addmask[b:b + 1, :]                            # (1, S)
            r0, r1 = b * S, (b + 1) * S
            head_ctx = []
            for h in range(n_heads):
                c0, c1 = h * head_dim, (h + 1) * head_dim
                qs = q[r0:r1, c0:c1]                             # (S, Dh)
                ks = k[r0:r1, c0:c1]
                vs = v[r0:r1, c0:c1]
                s = jnp.dot(qs, ks.T,
                            preferred_element_type=jnp.float32) * scale + m_b
                s = s - jnp.max(s, axis=-1, keepdims=True)
                p = jnp.exp(s)
                p = p * pl.reciprocal(jnp.sum(p, axis=-1, keepdims=True),
                                      approx=True)
                head_ctx.append(
                    jnp.dot(p, vs, preferred_element_type=jnp.float32))
            ctx_rows.append(jnp.concatenate(head_ctx, axis=-1))  # (S, H)
        ctx = jnp.concatenate(ctx_rows, axis=0)                  # (B*S, H)

        # attention output projection + residual + LayerNorm1 (fused epilogue)
        attn_out = jnp.dot(ctx, wo_ref[l],
                           preferred_element_type=jnp.float32) + bo_ref[l]
        x = layernorm(attn_out + x, ln1g_ref[l], ln1b_ref[l])

        # FFN: wi + GELU, wo2, residual + LayerNorm2 (fused epilogue)
        hmid = gelu(jnp.dot(x, wi_ref[l],
                            preferred_element_type=jnp.float32) + bi_ref[l])
        ffn = jnp.dot(hmid, wo2_ref[l],
                      preferred_element_type=jnp.float32) + bo2_ref[l]
        x = layernorm(ffn + x, ln2g_ref[l], ln2b_ref[l])

    # --- pooler: Linear + tanh on the [CLS] token (row b*S of x) ---
    cls_tok = jnp.concatenate([x[b * S:b * S + 1, :] for b in range(B)],
                              axis=0)                            # (B, H)
    pooled = jnp.tanh(
        jnp.dot(cls_tok, poolw_ref[...],
                preferred_element_type=jnp.float32) + poolb_ref[...])

    # --- Dropout(p=0.3) is identity at inference; classifier + softmax(dim=1) ---
    logits = jnp.dot(pooled, clsw_ref[...],
                     preferred_element_type=jnp.float32) + clsb_ref[...]
    logits = logits - jnp.max(logits, axis=1, keepdims=True)
    e = jnp.exp(logits)
    out_ref[...] = e / jnp.sum(e, axis=1, keepdims=True)


# ------------------------------ Model wrapper -------------------------------

def init_params(key):
    H, I = CFG["hidden"], CFG["intermediate"]
    keys = iter(jax.random.split(key, 64))
    std = 0.02

    def w(shape):
        return jax.random.normal(next(keys), shape, jnp.float32) * std

    params = {
        "tok_emb": w((CFG["vocab"], H)),
        "pos_emb": w((CFG["max_pos"], H)),
        "type_emb": w((CFG["type_vocab"], H)),
        "emb_ln_g": jnp.ones((H,), jnp.float32),
        "emb_ln_b": jnp.zeros((H,), jnp.float32),
        "layers": [],
        "pool_w": w((H, H)),
        "pool_b": jnp.zeros((H,), jnp.float32),
        "cls_w": w((H, CFG["n_classes"])),
        "cls_b": jnp.zeros((CFG["n_classes"],), jnp.float32),
    }
    for _ in range(CFG["n_layers"]):
        params["layers"].append({
            "wq": w((H, H)), "bq": jnp.zeros((H,), jnp.float32),
            "wk": w((H, H)), "bk": jnp.zeros((H,), jnp.float32),
            "wv": w((H, H)), "bv": jnp.zeros((H,), jnp.float32),
            "wo": w((H, H)), "bo": jnp.zeros((H,), jnp.float32),
            "ln1_g": jnp.ones((H,), jnp.float32), "ln1_b": jnp.zeros((H,), jnp.float32),
            "wi": w((H, I)), "bi": jnp.zeros((I,), jnp.float32),
            "wo2": w((I, H)), "bo2": jnp.zeros((H,), jnp.float32),
            "ln2_g": jnp.ones((H,), jnp.float32), "ln2_b": jnp.zeros((H,), jnp.float32),
        })
    return params


@jax.jit
def sentiment_classifier_forward(params, input_ids, attention_mask):
    B, S = input_ids.shape
    H = CFG["hidden"]
    nH = CFG["n_heads"]
    Dh = H // nH
    C = CFG["n_classes"]

    # --- glue: embedding gathers (tiny) + additive mask, computed once ---
    emb = (params["tok_emb"][input_ids]
           + params["pos_emb"][jnp.arange(S)][None, :, :]
           + params["type_emb"][0][None, None, :])
    x0 = emb.reshape(B * S, H)
    addmask = (1.0 - attention_mask.astype(jnp.float32)) * (-1e9)   # (B, S)

    # --- stack per-layer weights into [L, ...] slabs (QKV fused to [H, 3H]) ---
    Ls = params["layers"]
    wqkv = jnp.stack([jnp.concatenate([lp["wq"], lp["wk"], lp["wv"]], axis=1)
                      for lp in Ls])
    bqkv = jnp.stack([jnp.concatenate([lp["bq"], lp["bk"], lp["bv"]])[None, :]
                      for lp in Ls])
    wo = jnp.stack([lp["wo"] for lp in Ls])
    bo = jnp.stack([lp["bo"][None, :] for lp in Ls])
    ln1g = jnp.stack([lp["ln1_g"][None, :] for lp in Ls])
    ln1b = jnp.stack([lp["ln1_b"][None, :] for lp in Ls])
    wi = jnp.stack([lp["wi"] for lp in Ls])
    bi = jnp.stack([lp["bi"][None, :] for lp in Ls])
    wo2 = jnp.stack([lp["wo2"] for lp in Ls])
    bo2 = jnp.stack([lp["bo2"][None, :] for lp in Ls])
    ln2g = jnp.stack([lp["ln2_g"][None, :] for lp in Ls])
    ln2b = jnp.stack([lp["ln2_b"][None, :] for lp in Ls])

    kernel = functools.partial(
        _fused_bert_kernel,
        B=B, S=S, n_heads=nH, head_dim=Dh, n_layers=CFG["n_layers"],
        eps=1e-12, scale=1.0 / math.sqrt(Dh))

    # Single fused pallas_call: no grid, every operand fully resident in VMEM.
    probs = pl.pallas_call(
        kernel,
        out_shape=jax.ShapeDtypeStruct((B, C), jnp.float32),
    )(
        x0, addmask,
        params["emb_ln_g"].reshape(1, H), params["emb_ln_b"].reshape(1, H),
        wqkv, bqkv, wo, bo, ln1g, ln1b, wi, bi, wo2, bo2, ln2g, ln2b,
        params["pool_w"], params["pool_b"].reshape(1, H),
        params["cls_w"], params["cls_b"].reshape(1, C),
    )
    return probs


# --------------------------------- main --------------------------------------

if __name__ == "__main__":
    key = jax.random.PRNGKey(0)
    k_params, k_ids = jax.random.split(key)

    B, S = 2, 8
    params = init_params(k_params)
    input_ids = jax.random.randint(k_ids, (B, S), 0, CFG["vocab"], dtype=jnp.int32)
    attention_mask = jnp.array(
        [[1, 1, 1, 1, 1, 1, 0, 0],
         [1, 1, 1, 1, 0, 0, 0, 0]], dtype=jnp.int32)

    probs = sentiment_classifier_forward(params, input_ids, attention_mask)
    probs = jax.block_until_ready(probs)

    assert probs.shape == (B, CFG["n_classes"])
    assert bool(jnp.all(jnp.isfinite(probs)))
    # rows of a softmax must sum to 1
    assert bool(jnp.allclose(jnp.sum(probs, axis=1), 1.0, atol=1e-5))
    print("KERNEL_OK")
</pallas_src>

<mosaic_0001>
module attributes {stable_mosaic.version = 11 : i64} {
  func.func @_fused_bert_kernel(%arg0: memref<16x32xf32, #tpu.memory_space<vmem>>, %arg1: memref<2x8xf32, #tpu.memory_space<vmem>>, %arg2: memref<1x32xf32, #tpu.memory_space<vmem>>, %arg3: memref<1x32xf32, #tpu.memory_space<vmem>>, %arg4: memref<2x32x96xf32, #tpu.memory_space<vmem>>, %arg5: memref<2x1x96xf32, #tpu.memory_space<vmem>>, %arg6: memref<2x32x32xf32, #tpu.memory_space<vmem>>, %arg7: memref<2x1x32xf32, #tpu.memory_space<vmem>>, %arg8: memref<2x1x32xf32, #tpu.memory_space<vmem>>, %arg9: memref<2x1x32xf32, #tpu.memory_space<vmem>>, %arg10: memref<2x32x64xf32, #tpu.memory_space<vmem>>, %arg11: memref<2x1x64xf32, #tpu.memory_space<vmem>>, %arg12: memref<2x64x32xf32, #tpu.memory_space<vmem>>, %arg13: memref<2x1x32xf32, #tpu.memory_space<vmem>>, %arg14: memref<2x1x32xf32, #tpu.memory_space<vmem>>, %arg15: memref<2x1x32xf32, #tpu.memory_space<vmem>>, %arg16: memref<32x32xf32, #tpu.memory_space<vmem>>, %arg17: memref<1x32xf32, #tpu.memory_space<vmem>>, %arg18: memref<32x3xf32, #tpu.memory_space<vmem>>, %arg19: memref<1x3xf32, #tpu.memory_space<vmem>>, %arg20: memref<2x3xf32, #tpu.memory_space<vmem>>) attributes {dimension_semantics = [], scalar_prefetch = 0 : i64, scratch_operands = 0 : i64, tpu.core_type = #tpu.core_type<tc>} {
    %c0 = arith.constant 0 : index
    %c0_0 = arith.constant 0 : index
    %0 = vector.load %arg0[%c0, %c0_0] : memref<16x32xf32, #tpu.memory_space<vmem>>, vector<16x32xf32>
    %c0_1 = arith.constant 0 : index
    %c0_2 = arith.constant 0 : index
    %1 = vector.load %arg2[%c0_1, %c0_2] : memref<1x32xf32, #tpu.memory_space<vmem>>, vector<1x32xf32>
    %c0_3 = arith.constant 0 : index
    %c0_4 = arith.constant 0 : index
    %2 = vector.load %arg3[%c0_3, %c0_4] : memref<1x32xf32, #tpu.memory_space<vmem>>, vector<1x32xf32>
    %cst = arith.constant dense<0.000000e+00> : vector<16xf32>
    %3 = vector.multi_reduction <add>, %0, %cst [1] : vector<16x32xf32> to vector<16xf32>
    %4 = vector.shape_cast %3 : vector<16xf32> to vector<16x1xf32>
    %cst_5 = arith.constant 3.200000e+01 : f32
    %5 = vector.broadcast %cst_5 : f32 to vector<16x1xf32>
    %6 = arith.divf %4, %5 : vector<16x1xf32>
    %7 = vector.broadcast %6 : vector<16x1xf32> to vector<16x32xf32>
    %8 = arith.subf %0, %7 : vector<16x32xf32>
    %9 = arith.mulf %8, %8 : vector<16x32xf32>
    %cst_6 = arith.constant dense<0.000000e+00> : vector<16xf32>
    %10 = vector.multi_reduction <add>, %9, %cst_6 [1] : vector<16x32xf32> to vector<16xf32>
    %11 = vector.shape_cast %10 : vector<16xf32> to vector<16x1xf32>
    %cst_7 = arith.constant 3.200000e+01 : f32
    %12 = vector.broadcast %cst_7 : f32 to vector<16x1xf32>
    %13 = arith.divf %11, %12 : vector<16x1xf32>
    %cst_8 = arith.constant 9.99999996E-13 : f32
    %14 = vector.broadcast %cst_8 : f32 to vector<16x1xf32>
    %15 = arith.addf %13, %14 : vector<16x1xf32>
    %16 = math.rsqrt %15 : vector<16x1xf32>
    %17 = vector.broadcast %16 : vector<16x1xf32> to vector<16x32xf32>
    %18 = arith.mulf %8, %17 : vector<16x32xf32>
    %19 = vector.broadcast %1 : vector<1x32xf32> to vector<16x32xf32>
    %20 = arith.mulf %18, %19 : vector<16x32xf32>
    %21 = vector.broadcast %2 : vector<1x32xf32> to vector<16x32xf32>
    %22 = arith.addf %20, %21 : vector<16x32xf32>
    %c0_9 = arith.constant 0 : index
    %c0_10 = arith.constant 0 : index
    %23 = vector.load %arg1[%c0_9, %c0_10] : memref<2x8xf32, #tpu.memory_space<vmem>>, vector<2x8xf32>
    %c0_11 = arith.constant 0 : index
    %c0_12 = arith.constant 0 : index
    %c0_13 = arith.constant 0 : index
    %24 = vector.load %arg4[%c0_11, %c0_12, %c0_13] : memref<2x32x96xf32, #tpu.memory_space<vmem>>, vector<1x32x96xf32>
    %25 = vector.shape_cast %24 : vector<1x32x96xf32> to vector<32x96xf32>
    %cst_14 = arith.constant dense<0.000000e+00> : vector<16x96xf32>
    %26 = tpu.matmul %22, %25, %cst_14 {dimension_numbers = #tpu.dot_dimension_numbers<[1], [0], [0], [1], [0, 0, 1, 1], [], []>} : vector<16x32xf32>, vector<32x96xf32>, vector<16x96xf32> -> vector<16x96xf32>
    %c0_15 = arith.constant 0 : index
    %c0_16 = arith.constant 0 : index
    %c0_17 = arith.constant 0 : index
    %27 = vector.load %arg5[%c0_15, %c0_16, %c0_17] : memref<2x1x96xf32, #tpu.memory_space<vmem>>, vector<1x1x96xf32>
    %28 = vector.shape_cast %27 : vector<1x1x96xf32> to vector<1x96xf32>
    %29 = vector.broadcast %28 : vector<1x96xf32> to vector<16x96xf32>
    %30 = arith.addf %26, %29 : vector<16x96xf32>
    %31 = vector.extract_strided_slice %30 {offsets = [0, 0], sizes = [16, 32], strides = [1, 1]} : vector<16x96xf32> to vector<16x32xf32>
    %32 = vector.extract_strided_slice %30 {offsets = [0, 32], sizes = [16, 32], strides = [1, 1]} : vector<16x96xf32> to vector<16x32xf32>
    %33 = vector.extract_strided_slice %30 {offsets = [0, 64], sizes = [16, 32], strides = [1, 1]} : vector<16x96xf32> to vector<16x32xf32>
    %34 = vector.extract_strided_slice %23 {offsets = [0, 0], sizes = [1, 8], strides = [1, 1]} : vector<2x8xf32> to vector<1x8xf32>
    %35 = vector.extract_strided_slice %31 {offsets = [0, 0], sizes = [8, 8], strides = [1, 1]} : vector<16x32xf32> to vector<8x8xf32>
    %36 = vector.extract_strided_slice %32 {offsets = [0, 0], sizes = [8, 8], strides = [1, 1]} : vector<16x32xf32> to vector<8x8xf32>
    %37 = vector.extract_strided_slice %33 {offsets = [0, 0], sizes = [8, 8], strides = [1, 1]} : vector<16x32xf32> to vector<8x8xf32>
    %38 = tpu.transpose %36, [1, 0] : vector<8x8xf32> -> vector<8x8xf32>
    %cst_18 = arith.constant dense<0.000000e+00> : vector<8x8xf32>
    %39 = tpu.matmul %35, %38, %cst_18 {dimension_numbers = #tpu.dot_dimension_numbers<[1], [0], [0], [1], [0, 0, 1, 1], [], []>} : vector<8x8xf32>, vector<8x8xf32>, vector<8x8xf32> -> vector<8x8xf32>
    %cst_19 = arith.constant 0.353553385 : f32
    %40 = vector.broadcast %cst_19 : f32 to vector<8x8xf32>
    %41 = arith.mulf %39, %40 : vector<8x8xf32>
    %42 = vector.broadcast %34 : vector<1x8xf32> to vector<8x8xf32>
    %43 = arith.addf %41, %42 : vector<8x8xf32>
    %cst_20 = arith.constant dense<0xFF800000> : vector<8xf32>
    %44 = vector.multi_reduction <maximumf>, %43, %cst_20 [1] : vector<8x8xf32> to vector<8xf32>
    %45 = vector.shape_cast %44 : vector<8xf32> to vector<8x1xf32>
    %46 = vector.broadcast %45 : vector<8x1xf32> to vector<8x8xf32>
    %47 = arith.subf %43, %46 : vector<8x8xf32>
    %48 = math.exp %47 : vector<8x8xf32>
    %cst_21 = arith.constant dense<0.000000e+00> : vector<8xf32>
    %49 = vector.multi_reduction <add>, %48, %cst_21 [1] : vector<8x8xf32> to vector<8xf32>
    %50 = vector.shape_cast %49 : vector<8xf32> to vector<8x1xf32>
    %51 = tpu.reciprocal %50 {approx = true} : vector<8x1xf32> -> vector<8x1xf32>
    %52 = vector.broadcast %51 : vector<8x1xf32> to vector<8x8xf32>
    %53 = arith.mulf %48, %52 : vector<8x8xf32>
    %cst_22 = arith.constant dense<0.000000e+00> : vector<8x8xf32>
    %54 = tpu.matmul %53, %37, %cst_22 {dimension_numbers = #tpu.dot_dimension_numbers<[1], [0], [0], [1], [0, 0, 1, 1], [], []>} : vector<8x8xf32>, vector<8x8xf32>, vector<8x8xf32> -> vector<8x8xf32>
    %55 = vector.extract_strided_slice %31 {offsets = [0, 8], sizes = [8, 8], strides = [1, 1]} : vector<16x32xf32> to vector<8x8xf32>
    %56 = vector.extract_strided_slice %32 {offsets = [0, 8], sizes = [8, 8], strides = [1, 1]} : vector<16x32xf32> to vector<8x8xf32>
    %57 = vector.extract_strided_slice %33 {offsets = [0, 8], sizes = [8, 8], strides = [1, 1]} : vector<16x32xf32> to vector<8x8xf32>
    %58 = tpu.transpose %56, [1, 0] : vector<8x8xf32> -> vector<8x8xf32>
    %cst_23 = arith.constant dense<0.000000e+00> : vector<8x8xf32>
    %59 = tpu.matmul %55, %58, %cst_23 {dimension_numbers = #tpu.dot_dimension_numbers<[1], [0], [0], [1], [0, 0, 1, 1], [], []>} : vector<8x8xf32>, vector<8x8xf32>, vector<8x8xf32> -> vector<8x8xf32>
    %cst_24 = arith.constant 0.353553385 : f32
    %60 = vector.broadcast %cst_24 : f32 to vector<8x8xf32>
    %61 = arith.mulf %59, %60 : vector<8x8xf32>
    %62 = vector.broadcast %34 : vector<1x8xf32> to vector<8x8xf32>
    %63 = arith.addf %61, %62 : vector<8x8xf32>
    %cst_25 = arith.constant dense<0xFF800000> : vector<8xf32>
    %64 = vector.multi_reduction <maximumf>, %63, %cst_25 [1] : vector<8x8xf32> to vector<8xf32>
    %65 = vector.shape_cast %64 : vector<8xf32> to vector<8x1xf32>
    %66 = vector.broadcast %65 : vector<8x1xf32> to vector<8x8xf32>
    %67 = arith.subf %63, %66 : vector<8x8xf32>
    %68 = math.exp %67 : vector<8x8xf32>
    %cst_26 = arith.constant dense<0.000000e+00> : vector<8xf32>
    %69 = vector.multi_reduction <add>, %68, %cst_26 [1] : vector<8x8xf32> to vector<8xf32>
    %70 = vector.shape_cast %69 : vector<8xf32> to vector<8x1xf32>
    %71 = tpu.reciprocal %70 {approx = true} : vector<8x1xf32> -> vector<8x1xf32>
    %72 = vector.broadcast %71 : vector<8x1xf32> to vector<8x8xf32>
    %73 = arith.mulf %68, %72 : vector<8x8xf32>
    %cst_27 = arith.constant dense<0.000000e+00> : vector<8x8xf32>
    %74 = tpu.matmul %73, %57, %cst_27 {dimension_numbers = #tpu.dot_dimension_numbers<[1], [0], [0], [1], [0, 0, 1, 1], [], []>} : vector<8x8xf32>, vector<8x8xf32>, vector<8x8xf32> -> vector<8x8xf32>
    %75 = vector.extract_strided_slice %31 {offsets = [0, 16], sizes = [8, 8], strides = [1, 1]} : vector<16x32xf32> to vector<8x8xf32>
    %76 = vector.extract_strided_slice %32 {offsets = [0, 16], sizes = [8, 8], strides = [1, 1]} : vector<16x32xf32> to vector<8x8xf32>
    %77 = vector.extract_strided_slice %33 {offsets = [0, 16], sizes = [8, 8], strides = [1, 1]} : vector<16x32xf32> to vector<8x8xf32>
    %78 = tpu.transpose %76, [1, 0] : vector<8x8xf32> -> vector<8x8xf32>
    %cst_28 = arith.constant dense<0.000000e+00> : vector<8x8xf32>
    %79 = tpu.matmul %75, %78, %cst_28 {dimension_numbers = #tpu.dot_dimension_numbers<[1], [0], [0], [1], [0, 0, 1, 1], [], []>} : vector<8x8xf32>, vector<8x8xf32>, vector<8x8xf32> -> vector<8x8xf32>
    %cst_29 = arith.constant 0.353553385 : f32
    %80 = vector.broadcast %cst_29 : f32 to vector<8x8xf32>
    %81 = arith.mulf %79, %80 : vector<8x8xf32>
    %82 = vector.broadcast %34 : vector<1x8xf32> to vector<8x8xf32>
    %83 = arith.addf %81, %82 : vector<8x8xf32>
    %cst_30 = arith.constant dense<0xFF800000> : vector<8xf32>
    %84 = vector.multi_reduction <maximumf>, %83, %cst_30 [1] : vector<8x8xf32> to vector<8xf32>
    %85 = vector.shape_cast %84 : vector<8xf32> to vector<8x1xf32>
    %86 = vector.broadcast %85 : vector<8x1xf32> to vector<8x8xf32>
    %87 = arith.subf %83, %86 : vector<8x8xf32>
    %88 = math.exp %87 : vector<8x8xf32>
    %cst_31 = arith.constant dense<0.000000e+00> : vector<8xf32>
    %89 = vector.multi_reduction <add>, %88, %cst_31 [1] : vector<8x8xf32> to vector<8xf32>
    %90 = vector.shape_cast %89 : vector<8xf32> to vector<8x1xf32>
    %91 = tpu.reciprocal %90 {approx = true} : vector<8x1xf32> -> vector<8x1xf32>
    %92 = vector.broadcast %91 : vector<8x1xf32> to vector<8x8xf32>
    %93 = arith.mulf %88, %92 : vector<8x8xf32>
    %cst_32 = arith.constant dense<0.000000e+00> : vector<8x8xf32>
    %94 = tpu.matmul %93, %77, %cst_32 {dimension_numbers = #tpu.dot_dimension_numbers<[1], [0], [0], [1], [0, 0, 1, 1], [], []>} : vector<8x8xf32>, vector<8x8xf32>, vector<8x8xf32> -> vector<8x8xf32>
    %95 = vector.extract_strided_slice %31 {offsets = [0, 24], sizes = [8, 8], strides = [1, 1]} : vector<16x32xf32> to vector<8x8xf32>
    %96 = vector.extract_strided_slice %32 {offsets = [0, 24], sizes = [8, 8], strides = [1, 1]} : vector<16x32xf32> to vector<8x8xf32>
    %97 = vector.extract_strided_slice %33 {offsets = [0, 24], sizes = [8, 8], strides = [1, 1]} : vector<16x32xf32> to vector<8x8xf32>
    %98 = tpu.transpose %96, [1, 0] : vector<8x8xf32> -> vector<8x8xf32>
    %cst_33 = arith.constant dense<0.000000e+00> : vector<8x8xf32>
    %99 = tpu.matmul %95, %98, %cst_33 {dimension_numbers = #tpu.dot_dimension_numbers<[1], [0], [0], [1], [0, 0, 1, 1], [], []>} : vector<8x8xf32>, vector<8x8xf32>, vector<8x8xf32> -> vector<8x8xf32>
    %cst_34 = arith.constant 0.353553385 : f32
    %100 = vector.broadcast %cst_34 : f32 to vector<8x8xf32>
    %101 = arith.mulf %99, %100 : vector<8x8xf32>
    %102 = vector.broadcast %34 : vector<1x8xf32> to vector<8x8xf32>
    %103 = arith.addf %101, %102 : vector<8x8xf32>
    %cst_35 = arith.constant dense<0xFF800000> : vector<8xf32>
    %104 = vector.multi_reduction <maximumf>, %103, %cst_35 [1] : vector<8x8xf32> to vector<8xf32>
    %105 = vector.shape_cast %104 : vector<8xf32> to vector<8x1xf32>
    %106 = vector.broadcast %105 : vector<8x1xf32> to vector<8x8xf32>
    %107 = arith.subf %103, %106 : vector<8x8xf32>
    %108 = math.exp %107 : vector<8x8xf32>
    %cst_36 = arith.constant dense<0.000000e+00> : vector<8xf32>
    %109 = vector.multi_reduction <add>, %108, %cst_36 [1] : vector<8x8xf32> to vector<8xf32>
    %110 = vector.shape_cast %109 : vector<8xf32> to vector<8x1xf32>
    %111 = tpu.reciprocal %110 {approx = true} : vector<8x1xf32> -> vector<8x1xf32>
    %112 = vector.broadcast %111 : vector<8x1xf32> to vector<8x8xf32>
    %113 = arith.mulf %108, %112 : vector<8x8xf32>
    %cst_37 = arith.constant dense<0.000000e+00> : vector<8x8xf32>
    %114 = tpu.matmul %113, %97, %cst_37 {dimension_numbers = #tpu.dot_dimension_numbers<[1], [0], [0], [1], [0, 0, 1, 1], [], []>} : vector<8x8xf32>, vector<8x8xf32>, vector<8x8xf32> -> vector<8x8xf32>
    %115 = tpu.concatenate %54, %74, %94, %114 in 1 : vector<8x8xf32>, vector<8x8xf32>, vector<8x8xf32>, vector<8x8xf32> -> vector<8x32xf32>
    %116 = vector.extract_strided_slice %23 {offsets = [1, 0], sizes = [1, 8], strides = [1, 1]} : vector<2x8xf32> to vector<1x8xf32>
    %117 = vector.extract_strided_slice %31 {offsets = [8, 0], sizes = [8, 8], strides = [1, 1]} : vector<16x32xf32> to vector<8x8xf32>
    %118 = vector.extract_strided_slice %32 {offsets = [8, 0], sizes = [8, 8], strides = [1, 1]} : vector<16x32xf32> to vector<8x8xf32>
    %119 = vector.extract_strided_slice %33 {offsets = [8, 0], sizes = [8, 8], strides = [1, 1]} : vector<16x32xf32> to vector<8x8xf32>
    %120 = tpu.transpose %118, [1, 0] : vector<8x8xf32> -> vector<8x8xf32>
    %cst_38 = arith.constant dense<0.000000e+00> : vector<8x8xf32>
    %121 = tpu.matmul %117, %120, %cst_38 {dimension_numbers = #tpu.dot_dimension_numbers<[1], [0], [0], [1], [0, 0, 1, 1], [], []>} : vector<8x8xf32>, vector<8x8xf32>, vector<8x8xf32> -> vector<8x8xf32>
    %cst_39 = arith.constant 0.353553385 : f32
    %122 = vector.broadcast %cst_39 : f32 to vector<8x8xf32>
    %123 = arith.mulf %121, %122 : vector<8x8xf32>
    %124 = vector.broadcast %116 : vector<1x8xf32> to vector<8x8xf32>
    %125 = arith.addf %123, %124 : vector<8x8xf32>
    %cst_40 = arith.constant dense<0xFF800000> : vector<8xf32>
    %126 = vector.multi_reduction <maximumf>, %125, %cst_40 [1] : vector<8x8xf32> to vector<8xf32>
    %127 = vector.shape_cast %126 : vector<8xf32> to vector<8x1xf32>
    %128 = vector.broadcast %127 : vector<8x1xf32> to vector<8x8xf32>
    %129 = arith.subf %125, %128 : vector<8x8xf32>
    %130 = math.exp %129 : vector<8x8xf32>
    %cst_41 = arith.constant dense<0.000000e+00> : vector<8xf32>
    %131 = vector.multi_reduction <add>, %130, %cst_41 [1] : vector<8x8xf32> to vector<8xf32>
    %132 = vector.shape_cast %131 : vector<8xf32> to vector<8x1xf32>
    %133 = tpu.reciprocal %132 {approx = true} : vector<8x1xf32> -> vector<8x1xf32>
    %134 = vector.broadcast %133 : vector<8x1xf32> to vector<8x8xf32>
    %135 = arith.mulf %130, %134 : vector<8x8xf32>
    %cst_42 = arith.constant dense<0.000000e+00> : vector<8x8xf32>
    %136 = tpu.matmul %135, %119, %cst_42 {dimension_numbers = #tpu.dot_dimension_numbers<[1], [0], [0], [1], [0, 0, 1, 1], [], []>} : vector<8x8xf32>, vector<8x8xf32>, vector<8x8xf32> -> vector<8x8xf32>
    %137 = vector.extract_strided_slice %31 {offsets = [8, 8], sizes = [8, 8], strides = [1, 1]} : vector<16x32xf32> to vector<8x8xf32>
    %138 = vector.extract_strided_slice %32 {offsets = [8, 8], sizes = [8, 8], strides = [1, 1]} : vector<16x32xf32> to vector<8x8xf32>
    %139 = vector.extract_strided_slice %33 {offsets = [8, 8], sizes = [8, 8], strides = [1, 1]} : vector<16x32xf32> to vector<8x8xf32>
    %140 = tpu.transpose %138, [1, 0] : vector<8x8xf32> -> vector<8x8xf32>
    %cst_43 = arith.constant dense<0.000000e+00> : vector<8x8xf32>
    %141 = tpu.matmul %137, %140, %cst_43 {dimension_numbers = #tpu.dot_dimension_numbers<[1], [0], [0], [1], [0, 0, 1, 1], [], []>} : vector<8x8xf32>, vector<8x8xf32>, vector<8x8xf32> -> vector<8x8xf32>
    %cst_44 = arith.constant 0.353553385 : f32
    %142 = vector.broadcast %cst_44 : f32 to vector<8x8xf32>
    %143 = arith.mulf %141, %142 : vector<8x8xf32>
    %144 = vector.broadcast %116 : vector<1x8xf32> to vector<8x8xf32>
    %145 = arith.addf %143, %144 : vector<8x8xf32>
    %cst_45 = arith.constant dense<0xFF800000> : vector<8xf32>
    %146 = vector.multi_reduction <maximumf>, %145, %cst_45 [1] : vector<8x8xf32> to vector<8xf32>
    %147 = vector.shape_cast %146 : vector<8xf32> to vector<8x1xf32>
    %148 = vector.broadcast %147 : vector<8x1xf32> to vector<8x8xf32>
    %149 = arith.subf %145, %148 : vector<8x8xf32>
    %150 = math.exp %149 : vector<8x8xf32>
    %cst_46 = arith.constant dense<0.000000e+00> : vector<8xf32>
    %151 = vector.multi_reduction <add>, %150, %cst_46 [1] : vector<8x8xf32> to vector<8xf32>
    %152 = vector.shape_cast %151 : vector<8xf32> to vector<8x1xf32>
    %153 = tpu.reciprocal %152 {approx = true} : vector<8x1xf32> -> vector<8x1xf32>
    %154 = vector.broadcast %153 : vector<8x1xf32> to vector<8x8xf32>
    %155 = arith.mulf %150, %154 : vector<8x8xf32>
    %cst_47 = arith.constant dense<0.000000e+00> : vector<8x8xf32>
    %156 = tpu.matmul %155, %139, %cst_47 {dimension_numbers = #tpu.dot_dimension_numbers<[1], [0], [0], [1], [0, 0, 1, 1], [], []>} : vector<8x8xf32>, vector<8x8xf32>, vector<8x8xf32> -> vector<8x8xf32>
    %157 = vector.extract_strided_slice %31 {offsets = [8, 16], sizes = [8, 8], strides = [1, 1]} : vector<16x32xf32> to vector<8x8xf32>
    %158 = vector.extract_strided_slice %32 {offsets = [8, 16], sizes = [8, 8], strides = [1, 1]} : vector<16x32xf32> to vector<8x8xf32>
    %159 = vector.extract_strided_slice %33 {offsets = [8, 16], sizes = [8, 8], strides = [1, 1]} : vector<16x32xf32> to vector<8x8xf32>
    %160 = tpu.transpose %158, [1, 0] : vector<8x8xf32> -> vector<8x8xf32>
    %cst_48 = arith.constant dense<0.000000e+00> : vector<8x8xf32>
    %161 = tpu.matmul %157, %160, %cst_48 {dimension_numbers = #tpu.dot_dimension_numbers<[1], [0], [0], [1], [0, 0, 1, 1], [], []>} : vector<8x8xf32>, vector<8x8xf32>, vector<8x8xf32> -> vector<8x8xf32>
    %cst_49 = arith.constant 0.353553385 : f32
    %162 = vector.broadcast %cst_49 : f32 to vector<8x8xf32>
    %163 = arith.mulf %161, %162 : vector<8x8xf32>
    %164 = vector.broadcast %116 : vector<1x8xf32> to vector<8x8xf32>
    %165 = arith.addf %163, %164 : vector<8x8xf32>
    %cst_50 = arith.constant dense<0xFF800000> : vector<8xf32>
    %166 = vector.multi_reduction <maximumf>, %165, %cst_50 [1] : vector<8x8xf32> to vector<8xf32>
    %167 = vector.shape_cast %166 : vector<8xf32> to vector<8x1xf32>
    %168 = vector.broadcast %167 : vector<8x1xf32> to vector<8x8xf32>
    %169 = arith.subf %165, %168 : vector<8x8xf32>
    %170 = math.exp %169 : vector<8x8xf32>
    %cst_51 = arith.constant dense<0.000000e+00> : vector<8xf32>
    %171 = vector.multi_reduction <add>, %170, %cst_51 [1] : vector<8x8xf32> to vector<8xf32>
    %172 = vector.shape_cast %171 : vector<8xf32> to vector<8x1xf32>
    %173 = tpu.reciprocal %172 {approx = true} : vector<8x1xf32> -> vector<8x1xf32>
    %174 = vector.broadcast %173 : vector<8x1xf32> to vector<8x8xf32>
    %175 = arith.mulf %170, %174 : vector<8x8xf32>
    %cst_52 = arith.constant dense<0.000000e+00> : vector<8x8xf32>
    %176 = tpu.matmul %175, %159, %cst_52 {dimension_numbers = #tpu.dot_dimension_numbers<[1], [0], [0], [1], [0, 0, 1, 1], [], []>} : vector<8x8xf32>, vector<8x8xf32>, vector<8x8xf32> -> vector<8x8xf32>
    %177 = vector.extract_strided_slice %31 {offsets = [8, 24], sizes = [8, 8], strides = [1, 1]} : vector<16x32xf32> to vector<8x8xf32>
    %178 = vector.extract_strided_slice %32 {offsets = [8, 24], sizes = [8, 8], strides = [1, 1]} : vector<16x32xf32> to vector<8x8xf32>
    %179 = vector.extract_strided_slice %33 {offsets = [8, 24], sizes = [8, 8], strides = [1, 1]} : vector<16x32xf32> to vector<8x8xf32>
    %180 = tpu.transpose %178, [1, 0] : vector<8x8xf32> -> vector<8x8xf32>
    %cst_53 = arith.constant dense<0.000000e+00> : vector<8x8xf32>
    %181 = tpu.matmul %177, %180, %cst_53 {dimension_numbers = #tpu.dot_dimension_numbers<[1], [0], [0], [1], [0, 0, 1, 1], [], []>} : vector<8x8xf32>, vector<8x8xf32>, vector<8x8xf32> -> vector<8x8xf32>
    %cst_54 = arith.constant 0.353553385 : f32
    %182 = vector.broadcast %cst_54 : f32 to vector<8x8xf32>
    %183 = arith.mulf %181, %182 : vector<8x8xf32>
    %184 = vector.broadcast %116 : vector<1x8xf32> to vector<8x8xf32>
    %185 = arith.addf %183, %184 : vector<8x8xf32>
    %cst_55 = arith.constant dense<0xFF800000> : vector<8xf32>
    %186 = vector.multi_reduction <maximumf>, %185, %cst_55 [1] : vector<8x8xf32> to vector<8xf32>
    %187 = vector.shape_cast %186 : vector<8xf32> to vector<8x1xf32>
    %188 = vector.broadcast %187 : vector<8x1xf32> to vector<8x8xf32>
    %189 = arith.subf %185, %188 : vector<8x8xf32>
    %190 = math.exp %189 : vector<8x8xf32>
    %cst_56 = arith.constant dense<0.000000e+00> : vector<8xf32>
    %191 = vector.multi_reduction <add>, %190, %cst_56 [1] : vector<8x8xf32> to vector<8xf32>
    %192 = vector.shape_cast %191 : vector<8xf32> to vector<8x1xf32>
    %193 = tpu.reciprocal %192 {approx = true} : vector<8x1xf32> -> vector<8x1xf32>
    %194 = vector.broadcast %193 : vector<8x1xf32> to vector<8x8xf32>
    %195 = arith.mulf %190, %194 : vector<8x8xf32>
    %cst_57 = arith.constant dense<0.000000e+00> : vector<8x8xf32>
    %196 = tpu.matmul %195, %179, %cst_57 {dimension_numbers = #tpu.dot_dimension_numbers<[1], [0], [0], [1], [0, 0, 1, 1], [], []>} : vector<8x8xf32>, vector<8x8xf32>, vector<8x8xf32> -> vector<8x8xf32>
    %197 = tpu.concatenate %136, %156, %176, %196 in 1 : vector<8x8xf32>, vector<8x8xf32>, vector<8x8xf32>, vector<8x8xf32> -> vector<8x32xf32>
    %198 = tpu.concatenate %115, %197 in 0 : vector<8x32xf32>, vector<8x32xf32> -> vector<16x32xf32>
    %c0_58 = arith.constant 0 : index
    %c0_59 = arith.constant 0 : index
    %c0_60 = arith.constant 0 : index
    %199 = vector.load %arg6[%c0_58, %c0_59, %c0_60] : memref<2x32x32xf32, #tpu.memory_space<vmem>>, vector<1x32x32xf32>
    %200 = vector.shape_cast %199 : vector<1x32x32xf32> to vector<32x32xf32>
    %cst_61 = arith.constant dense<0.000000e+00> : vector<16x32xf32>
    %201 = tpu.matmul %198, %200, %cst_61 {dimension_numbers = #tpu.dot_dimension_numbers<[1], [0], [0], [1], [0, 0, 1, 1], [], []>} : vector<16x32xf32>, vector<32x32xf32>, vector<16x32xf32> -> vector<16x32xf32>
    %c0_62 = arith.constant 0 : index
    %c0_63 = arith.constant 0 : index
    %c0_64 = arith.constant 0 : index
    %202 = vector.load %arg7[%c0_62, %c0_63, %c0_64] : memref<2x1x32xf32, #tpu.memory_space<vmem>>, vector<1x1x32xf32>
    %203 = vector.shape_cast %202 : vector<1x1x32xf32> to vector<1x32xf32>
    %204 = vector.broadcast %203 : vector<1x32xf32> to vector<16x32xf32>
    %205 = arith.addf %201, %204 : vector<16x32xf32>
    %206 = arith.addf %205, %22 : vector<16x32xf32>
    %c0_65 = arith.constant 0 : index
    %c0_66 = arith.constant 0 : index
    %c0_67 = arith.constant 0 : index
    %207 = vector.load %arg8[%c0_65, %c0_66, %c0_67] : memref<2x1x32xf32, #tpu.memory_space<vmem>>, vector<1x1x32xf32>
    %208 = vector.shape_cast %207 : vector<1x1x32xf32> to vector<1x32xf32>
    %c0_68 = arith.constant 0 : index
    %c0_69 = arith.constant 0 : index
    %c0_70 = arith.constant 0 : index
    %209 = vector.load %arg9[%c0_68, %c0_69, %c0_70] : memref<2x1x32xf32, #tpu.memory_space<vmem>>, vector<1x1x32xf32>
    %210 = vector.shape_cast %209 : vector<1x1x32xf32> to vector<1x32xf32>
    %cst_71 = arith.constant dense<0.000000e+00> : vector<16xf32>
    %211 = vector.multi_reduction <add>, %206, %cst_71 [1] : vector<16x32xf32> to vector<16xf32>
    %212 = vector.shape_cast %211 : vector<16xf32> to vector<16x1xf32>
    %cst_72 = arith.constant 3.200000e+01 : f32
    %213 = vector.broadcast %cst_72 : f32 to vector<16x1xf32>
    %214 = arith.divf %212, %213 : vector<16x1xf32>
    %215 = vector.broadcast %214 : vector<16x1xf32> to vector<16x32xf32>
    %216 = arith.subf %206, %215 : vector<16x32xf32>
    %217 = arith.mulf %216, %216 : vector<16x32xf32>
    %cst_73 = arith.constant dense<0.000000e+00> : vector<16xf32>
    %218 = vector.multi_reduction <add>, %217, %cst_73 [1] : vector<16x32xf32> to vector<16xf32>
    %219 = vector.shape_cast %218 : vector<16xf32> to vector<16x1xf32>
    %cst_74 = arith.constant 3.200000e+01 : f32
    %220 = vector.broadcast %cst_74 : f32 to vector<16x1xf32>
    %221 = arith.divf %219, %220 : vector<16x1xf32>
    %cst_75 = arith.constant 9.99999996E-13 : f32
    %222 = vector.broadcast %cst_75 : f32 to vector<16x1xf32>
    %223 = arith.addf %221, %222 : vector<16x1xf32>
    %224 = math.rsqrt %223 : vector<16x1xf32>
    %225 = vector.broadcast %224 : vector<16x1xf32> to vector<16x32xf32>
    %226 = arith.mulf %216, %225 : vector<16x32xf32>
    %227 = vector.broadcast %208 : vector<1x32xf32> to vector<16x32xf32>
    %228 = arith.mulf %226, %227 : vector<16x32xf32>
    %229 = vector.broadcast %210 : vector<1x32xf32> to vector<16x32xf32>
    %230 = arith.addf %228, %229 : vector<16x32xf32>
    %c0_76 = arith.constant 0 : index
    %c0_77 = arith.constant 0 : index
    %c0_78 = arith.constant 0 : index
    %231 = vector.load %arg10[%c0_76, %c0_77, %c0_78] : memref<2x32x64xf32, #tpu.memory_space<vmem>>, vector<1x32x64xf32>
    %232 = vector.shape_cast %231 : vector<1x32x64xf32> to vector<32x64xf32>
    %cst_79 = arith.constant dense<0.000000e+00> : vector<16x64xf32>
    %233 = tpu.matmul %230, %232, %cst_79 {dimension_numbers = #tpu.dot_dimension_numbers<[1], [0], [0], [1], [0, 0, 1, 1], [], []>} : vector<16x32xf32>, vector<32x64xf32>, vector<16x64xf32> -> vector<16x64xf32>
    %c0_80 = arith.constant 0 : index
    %c0_81 = arith.constant 0 : index
    %c0_82 = arith.constant 0 : index
    %234 = vector.load %arg11[%c0_80, %c0_81, %c0_82] : memref<2x1x64xf32, #tpu.memory_space<vmem>>, vector<1x1x64xf32>
    %235 = vector.shape_cast %234 : vector<1x1x64xf32> to vector<1x64xf32>
    %236 = vector.broadcast %235 : vector<1x64xf32> to vector<16x64xf32>
    %237 = arith.addf %233, %236 : vector<16x64xf32>
    %cst_83 = arith.constant 5.000000e-01 : f32
    %238 = vector.broadcast %cst_83 : f32 to vector<16x64xf32>
    %239 = arith.mulf %238, %237 : vector<16x64xf32>
    %cst_84 = arith.constant 4.471500e-02 : f32
    %240 = vector.broadcast %cst_84 : f32 to vector<16x64xf32>
    %241 = arith.mulf %240, %237 : vector<16x64xf32>
    %242 = arith.mulf %241, %237 : vector<16x64xf32>
    %243 = arith.mulf %242, %237 : vector<16x64xf32>
    %244 = arith.addf %237, %243 : vector<16x64xf32>
    %cst_85 = arith.constant 0.797884583 : f32
    %245 = vector.broadcast %cst_85 : f32 to vector<16x64xf32>
    %246 = arith.mulf %245, %244 : vector<16x64xf32>
    %247 = math.tanh %246 : vector<16x64xf32>
    %cst_86 = arith.constant 1.000000e+00 : f32
    %248 = vector.broadcast %cst_86 : f32 to vector<16x64xf32>
    %249 = arith.addf %248, %247 : vector<16x64xf32>
    %250 = arith.mulf %239, %249 : vector<16x64xf32>
    %c0_87 = arith.constant 0 : index
    %c0_88 = arith.constant 0 : index
    %c0_89 = arith.constant 0 : index
    %251 = vector.load %arg12[%c0_87, %c0_88, %c0_89] : memref<2x64x32xf32, #tpu.memory_space<vmem>>, vector<1x64x32xf32>
    %252 = vector.shape_cast %251 : vector<1x64x32xf32> to vector<64x32xf32>
    %cst_90 = arith.constant dense<0.000000e+00> : vector<16x32xf32>
    %253 = tpu.matmul %250, %252, %cst_90 {dimension_numbers = #tpu.dot_dimension_numbers<[1], [0], [0], [1], [0, 0, 1, 1], [], []>} : vector<16x64xf32>, vector<64x32xf32>, vector<16x32xf32> -> vector<16x32xf32>
    %c0_91 = arith.constant 0 : index
    %c0_92 = arith.constant 0 : index
    %c0_93 = arith.constant 0 : index
    %254 = vector.load %arg13[%c0_91, %c0_92, %c0_93] : memref<2x1x32xf32, #tpu.memory_space<vmem>>, vector<1x1x32xf32>
    %255 = vector.shape_cast %254 : vector<1x1x32xf32> to vector<1x32xf32>
    %256 = vector.broadcast %255 : vector<1x32xf32> to vector<16x32xf32>
    %257 = arith.addf %253, %256 : vector<16x32xf32>
    %258 = arith.addf %257, %230 : vector<16x32xf32>
    %c0_94 = arith.constant 0 : index
    %c0_95 = arith.constant 0 : index
    %c0_96 = arith.constant 0 : index
    %259 = vector.load %arg14[%c0_94, %c0_95, %c0_96] : memref<2x1x32xf32, #tpu.memory_space<vmem>>, vector<1x1x32xf32>
    %260 = vector.shape_cast %259 : vector<1x1x32xf32> to vector<1x32xf32>
    %c0_97 = arith.constant 0 : index
    %c0_98 = arith.constant 0 : index
    %c0_99 = arith.constant 0 : index
    %261 = vector.load %arg15[%c0_97, %c0_98, %c0_99] : memref<2x1x32xf32, #tpu.memory_space<vmem>>, vector<1x1x32xf32>
    %262 = vector.shape_cast %261 : vector<1x1x32xf32> to vector<1x32xf32>
    %cst_100 = arith.constant dense<0.000000e+00> : vector<16xf32>
    %263 = vector.multi_reduction <add>, %258, %cst_100 [1] : vector<16x32xf32> to vector<16xf32>
    %264 = vector.shape_cast %263 : vector<16xf32> to vector<16x1xf32>
    %cst_101 = arith.constant 3.200000e+01 : f32
    %265 = vector.broadcast %cst_101 : f32 to vector<16x1xf32>
    %266 = arith.divf %264, %265 : vector<16x1xf32>
    %267 = vector.broadcast %266 : vector<16x1xf32> to vector<16x32xf32>
    %268 = arith.subf %258, %267 : vector<16x32xf32>
    %269 = arith.mulf %268, %268 : vector<16x32xf32>
    %cst_102 = arith.constant dense<0.000000e+00> : vector<16xf32>
    %270 = vector.multi_reduction <add>, %269, %cst_102 [1] : vector<16x32xf32> to vector<16xf32>
    %271 = vector.shape_cast %270 : vector<16xf32> to vector<16x1xf32>
    %cst_103 = arith.constant 3.200000e+01 : f32
    %272 = vector.broadcast %cst_103 : f32 to vector<16x1xf32>
    %273 = arith.divf %271, %272 : vector<16x1xf32>
    %cst_104 = arith.constant 9.99999996E-13 : f32
    %274 = vector.broadcast %cst_104 : f32 to vector<16x1xf32>
    %275 = arith.addf %273, %274 : vector<16x1xf32>
    %276 = math.rsqrt %275 : vector<16x1xf32>
    %277 = vector.broadcast %276 : vector<16x1xf32> to vector<16x32xf32>
    %278 = arith.mulf %268, %277 : vector<16x32xf32>
    %279 = vector.broadcast %260 : vector<1x32xf32> to vector<16x32xf32>
    %280 = arith.mulf %278, %279 : vector<16x32xf32>
    %281 = vector.broadcast %262 : vector<1x32xf32> to vector<16x32xf32>
    %282 = arith.addf %280, %281 : vector<16x32xf32>
    %c1 = arith.constant 1 : index
    %c0_105 = arith.constant 0 : index
    %c0_106 = arith.constant 0 : index
    %283 = vector.load %arg4[%c1, %c0_105, %c0_106] : memref<2x32x96xf32, #tpu.memory_space<vmem>>, vector<1x32x96xf32>
    %284 = vector.shape_cast %283 : vector<1x32x96xf32> to vector<32x96xf32>
    %cst_107 = arith.constant dense<0.000000e+00> : vector<16x96xf32>
    %285 = tpu.matmul %282, %284, %cst_107 {dimension_numbers = #tpu.dot_dimension_numbers<[1], [0], [0], [1], [0, 0, 1, 1], [], []>} : vector<16x32xf32>, vector<32x96xf32>, vector<16x96xf32> -> vector<16x96xf32>
    %c1_108 = arith.constant 1 : index
    %c0_109 = arith.constant 0 : index
    %c0_110 = arith.constant 0 : index
    %286 = vector.load %arg5[%c1_108, %c0_109, %c0_110] : memref<2x1x96xf32, #tpu.memory_space<vmem>>, vector<1x1x96xf32>
    %287 = vector.shape_cast %286 : vector<1x1x96xf32> to vector<1x96xf32>
    %288 = vector.broadcast %287 : vector<1x96xf32> to vector<16x96xf32>
    %289 = arith.addf %285, %288 : vector<16x96xf32>
    %290 = vector.extract_strided_slice %289 {offsets = [0, 0], sizes = [16, 32], strides = [1, 1]} : vector<16x96xf32> to vector<16x32xf32>
    %291 = vector.extract_strided_slice %289 {offsets = [0, 32], sizes = [16, 32], strides = [1, 1]} : vector<16x96xf32> to vector<16x32xf32>
    %292 = vector.extract_strided_slice %289 {offsets = [0, 64], sizes = [16, 32], strides = [1, 1]} : vector<16x96xf32> to vector<16x32xf32>
    %293 = vector.extract_strided_slice %23 {offsets = [0, 0], sizes = [1, 8], strides = [1, 1]} : vector<2x8xf32> to vector<1x8xf32>
    %294 = vector.extract_strided_slice %290 {offsets = [0, 0], sizes = [8, 8], strides = [1, 1]} : vector<16x32xf32> to vector<8x8xf32>
    %295 = vector.extract_strided_slice %291 {offsets = [0, 0], sizes = [8, 8], strides = [1, 1]} : vector<16x32xf32> to vector<8x8xf32>
    %296 = vector.extract_strided_slice %292 {offsets = [0, 0], sizes = [8, 8], strides = [1, 1]} : vector<16x32xf32> to vector<8x8xf32>
    %297 = tpu.transpose %295, [1, 0] : vector<8x8xf32> -> vector<8x8xf32>
    %cst_111 = arith.constant dense<0.000000e+00> : vector<8x8xf32>
    %298 = tpu.matmul %294, %297, %cst_111 {dimension_numbers = #tpu.dot_dimension_numbers<[1], [0], [0], [1], [0, 0, 1, 1], [], []>} : vector<8x8xf32>, vector<8x8xf32>, vector<8x8xf32> -> vector<8x8xf32>
    %cst_112 = arith.constant 0.353553385 : f32
    %299 = vector.broadcast %cst_112 : f32 to vector<8x8xf32>
    %300 = arith.mulf %298, %299 : vector<8x8xf32>
    %301 = vector.broadcast %293 : vector<1x8xf32> to vector<8x8xf32>
    %302 = arith.addf %300, %301 : vector<8x8xf32>
    %cst_113 = arith.constant dense<0xFF800000> : vector<8xf32>
    %303 = vector.multi_reduction <maximumf>, %302, %cst_113 [1] : vector<8x8xf32> to vector<8xf32>
    %304 = vector.shape_cast %303 : vector<8xf32> to vector<8x1xf32>
    %305 = vector.broadcast %304 : vector<8x1xf32> to vector<8x8xf32>
    %306 = arith.subf %302, %305 : vector<8x8xf32>
    %307 = math.exp %306 : vector<8x8xf32>
    %cst_114 = arith.constant dense<0.000000e+00> : vector<8xf32>
    %308 = vector.multi_reduction <add>, %307, %cst_114 [1] : vector<8x8xf32> to vector<8xf32>
    %309 = vector.shape_cast %308 : vector<8xf32> to vector<8x1xf32>
    %310 = tpu.reciprocal %309 {approx = true} : vector<8x1xf32> -> vector<8x1xf32>
    %311 = vector.broadcast %310 : vector<8x1xf32> to vector<8x8xf32>
    %312 = arith.mulf %307, %311 : vector<8x8xf32>
    %cst_115 = arith.constant dense<0.000000e+00> : vector<8x8xf32>
    %313 = tpu.matmul %312, %296, %cst_115 {dimension_numbers = #tpu.dot_dimension_numbers<[1], [0], [0], [1], [0, 0, 1, 1], [], []>} : vector<8x8xf32>, vector<8x8xf32>, vector<8x8xf32> -> vector<8x8xf32>
    %314 = vector.extract_strided_slice %290 {offsets = [0, 8], sizes = [8, 8], strides = [1, 1]} : vector<16x32xf32> to vector<8x8xf32>
    %315 = vector.extract_strided_slice %291 {offsets = [0, 8], sizes = [8, 8], strides = [1, 1]} : vector<16x32xf32> to vector<8x8xf32>
    %316 = vector.extract_strided_slice %292 {offsets = [0, 8], sizes = [8, 8], strides = [1, 1]} : vector<16x32xf32> to vector<8x8xf32>
    %317 = tpu.transpose %315, [1, 0] : vector<8x8xf32> -> vector<8x8xf32>
    %cst_116 = arith.constant dense<0.000000e+00> : vector<8x8xf32>
    %318 = tpu.matmul %314, %317, %cst_116 {dimension_numbers = #tpu.dot_dimension_numbers<[1], [0], [0], [1], [0, 0, 1, 1], [], []>} : vector<8x8xf32>, vector<8x8xf32>, vector<8x8xf32> -> vector<8x8xf32>
    %cst_117 = arith.constant 0.353553385 : f32
    %319 = vector.broadcast %cst_117 : f32 to vector<8x8xf32>
    %320 = arith.mulf %318, %319 : vector<8x8xf32>
    %321 = vector.broadcast %293 : vector<1x8xf32> to vector<8x8xf32>
    %322 = arith.addf %320, %321 : vector<8x8xf32>
    %cst_118 = arith.constant dense<0xFF800000> : vector<8xf32>
    %323 = vector.multi_reduction <maximumf>, %322, %cst_118 [1] : vector<8x8xf32> to vector<8xf32>
    %324 = vector.shape_cast %323 : vector<8xf32> to vector<8x1xf32>
    %325 = vector.broadcast %324 : vector<8x1xf32> to vector<8x8xf32>
    %326 = arith.subf %322, %325 : vector<8x8xf32>
    %327 = math.exp %326 : vector<8x8xf32>
    %cst_119 = arith.constant dense<0.000000e+00> : vector<8xf32>
    %328 = vector.multi_reduction <add>, %327, %cst_119 [1] : vector<8x8xf32> to vector<8xf32>
    %329 = vector.shape_cast %328 : vector<8xf32> to vector<8x1xf32>
    %330 = tpu.reciprocal %329 {approx = true} : vector<8x1xf32> -> vector<8x1xf32>
    %331 = vector.broadcast %330 : vector<8x1xf32> to vector<8x8xf32>
    %332 = arith.mulf %327, %331 : vector<8x8xf32>
    %cst_120 = arith.constant dense<0.000000e+00> : vector<8x8xf32>
    %333 = tpu.matmul %332, %316, %cst_120 {dimension_numbers = #tpu.dot_dimension_numbers<[1], [0], [0], [1], [0, 0, 1, 1], [], []>} : vector<8x8xf32>, vector<8x8xf32>, vector<8x8xf32> -> vector<8x8xf32>
    %334 = vector.extract_strided_slice %290 {offsets = [0, 16], sizes = [8, 8], strides = [1, 1]} : vector<16x32xf32> to vector<8x8xf32>
    %335 = vector.extract_strided_slice %291 {offsets = [0, 16], sizes = [8, 8], strides = [1, 1]} : vector<16x32xf32> to vector<8x8xf32>
    %336 = vector.extract_strided_slice %292 {offsets = [0, 16], sizes = [8, 8], strides = [1, 1]} : vector<16x32xf32> to vector<8x8xf32>
    %337 = tpu.transpose %335, [1, 0] : vector<8x8xf32> -> vector<8x8xf32>
    %cst_121 = arith.constant dense<0.000000e+00> : vector<8x8xf32>
    %338 = tpu.matmul %334, %337, %cst_121 {dimension_numbers = #tpu.dot_dimension_numbers<[1], [0], [0], [1], [0, 0, 1, 1], [], []>} : vector<8x8xf32>, vector<8x8xf32>, vector<8x8xf32> -> vector<8x8xf32>
    %cst_122 = arith.constant 0.353553385 : f32
    %339 = vector.broadcast %cst_122 : f32 to vector<8x8xf32>
    %340 = arith.mulf %338, %339 : vector<8x8xf32>
    %341 = vector.broadcast %293 : vector<1x8xf32> to vector<8x8xf32>
    %342 = arith.addf %340, %341 : vector<8x8xf32>
    %cst_123 = arith.constant dense<0xFF800000> : vector<8xf32>
    %343 = vector.multi_reduction <maximumf>, %342, %cst_123 [1] : vector<8x8xf32> to vector<8xf32>
    %344 = vector.shape_cast %343 : vector<8xf32> to vector<8x1xf32>
    %345 = vector.broadcast %344 : vector<8x1xf32> to vector<8x8xf32>
    %346 = arith.subf %342, %345 : vector<8x8xf32>
    %347 = math.exp %346 : vector<8x8xf32>
    %cst_124 = arith.constant dense<0.000000e+00> : vector<8xf32>
    %348 = vector.multi_reduction <add>, %347, %cst_124 [1] : vector<8x8xf32> to vector<8xf32>
    %349 = vector.shape_cast %348 : vector<8xf32> to vector<8x1xf32>
    %350 = tpu.reciprocal %349 {approx = true} : vector<8x1xf32> -> vector<8x1xf32>
    %351 = vector.broadcast %350 : vector<8x1xf32> to vector<8x8xf32>
    %352 = arith.mulf %347, %351 : vector<8x8xf32>
    %cst_125 = arith.constant dense<0.000000e+00> : vector<8x8xf32>
    %353 = tpu.matmul %352, %336, %cst_125 {dimension_numbers = #tpu.dot_dimension_numbers<[1], [0], [0], [1], [0, 0, 1, 1], [], []>} : vector<8x8xf32>, vector<8x8xf32>, vector<8x8xf32> -> vector<8x8xf32>
    %354 = vector.extract_strided_slice %290 {offsets = [0, 24], sizes = [8, 8], strides = [1, 1]} : vector<16x32xf32> to vector<8x8xf32>
    %355 = vector.extract_strided_slice %291 {offsets = [0, 24], sizes = [8, 8], strides = [1, 1]} : vector<16x32xf32> to vector<8x8xf32>
    %356 = vector.extract_strided_slice %292 {offsets = [0, 24], sizes = [8, 8], strides = [1, 1]} : vector<16x32xf32> to vector<8x8xf32>
    %357 = tpu.transpose %355, [1, 0] : vector<8x8xf32> -> vector<8x8xf32>
    %cst_126 = arith.constant dense<0.000000e+00> : vector<8x8xf32>
    %358 = tpu.matmul %354, %357, %cst_126 {dimension_numbers = #tpu.dot_dimension_numbers<[1], [0], [0], [1], [0, 0, 1, 1], [], []>} : vector<8x8xf32>, vector<8x8xf32>, vector<8x8xf32> -> vector<8x8xf32>
    %cst_127 = arith.constant 0.353553385 : f32
    %359 = vector.broadcast %cst_127 : f32 to vector<8x8xf32>
    %360 = arith.mulf %358, %359 : vector<8x8xf32>
    %361 = vector.broadcast %293 : vector<1x8xf32> to vector<8x8xf32>
    %362 = arith.addf %360, %361 : vector<8x8xf32>
    %cst_128 = arith.constant dense<0xFF800000> : vector<8xf32>
    %363 = vector.multi_reduction <maximumf>, %362, %cst_128 [1] : vector<8x8xf32> to vector<8xf32>
    %364 = vector.shape_cast %363 : vector<8xf32> to vector<8x1xf32>
    %365 = vector.broadcast %364 : vector<8x1xf32> to vector<8x8xf32>
    %366 = arith.subf %362, %365 : vector<8x8xf32>
    %367 = math.exp %366 : vector<8x8xf32>
    %cst_129 = arith.constant dense<0.000000e+00> : vector<8xf32>
    %368 = vector.multi_reduction <add>, %367, %cst_129 [1] : vector<8x8xf32> to vector<8xf32>
    %369 = vector.shape_cast %368 : vector<8xf32> to vector<8x1xf32>
    %370 = tpu.reciprocal %369 {approx = true} : vector<8x1xf32> -> vector<8x1xf32>
    %371 = vector.broadcast %370 : vector<8x1xf32> to vector<8x8xf32>
    %372 = arith.mulf %367, %371 : vector<8x8xf32>
    %cst_130 = arith.constant dense<0.000000e+00> : vector<8x8xf32>
    %373 = tpu.matmul %372, %356, %cst_130 {dimension_numbers = #tpu.dot_dimension_numbers<[1], [0], [0], [1], [0, 0, 1, 1], [], []>} : vector<8x8xf32>, vector<8x8xf32>, vector<8x8xf32> -> vector<8x8xf32>
    %374 = tpu.concatenate %313, %333, %353, %373 in 1 : vector<8x8xf32>, vector<8x8xf32>, vector<8x8xf32>, vector<8x8xf32> -> vector<8x32xf32>
    %375 = vector.extract_strided_slice %23 {offsets = [1, 0], sizes = [1, 8], strides = [1, 1]} : vector<2x8xf32> to vector<1x8xf32>
    %376 = vector.extract_strided_slice %290 {offsets = [8, 0], sizes = [8, 8], strides = [1, 1]} : vector<16x32xf32> to vector<8x8xf32>
    %377 = vector.extract_strided_slice %291 {offsets = [8, 0], sizes = [8, 8], strides = [1, 1]} : vector<16x32xf32> to vector<8x8xf32>
    %378 = vector.extract_strided_slice %292 {offsets = [8, 0], sizes = [8, 8], strides = [1, 1]} : vector<16x32xf32> to vector<8x8xf32>
    %379 = tpu.transpose %377, [1, 0] : vector<8x8xf32> -> vector<8x8xf32>
    %cst_131 = arith.constant dense<0.000000e+00> : vector<8x8xf32>
    %380 = tpu.matmul %376, %379, %cst_131 {dimension_numbers = #tpu.dot_dimension_numbers<[1], [0], [0], [1], [0, 0, 1, 1], [], []>} : vector<8x8xf32>, vector<8x8xf32>, vector<8x8xf32> -> vector<8x8xf32>
    %cst_132 = arith.constant 0.353553385 : f32
    %381 = vector.broadcast %cst_132 : f32 to vector<8x8xf32>
    %382 = arith.mulf %380, %381 : vector<8x8xf32>
    %383 = vector.broadcast %375 : vector<1x8xf32> to vector<8x8xf32>
    %384 = arith.addf %382, %383 : vector<8x8xf32>
    %cst_133 = arith.constant dense<0xFF800000> : vector<8xf32>
    %385 = vector.multi_reduction <maximumf>, %384, %cst_133 [1] : vector<8x8xf32> to vector<8xf32>
    %386 = vector.shape_cast %385 : vector<8xf32> to vector<8x1xf32>
    %387 = vector.broadcast %386 : vector<8x1xf32> to vector<8x8xf32>
    %388 = arith.subf %384, %387 : vector<8x8xf32>
    %389 = math.exp %388 : vector<8x8xf32>
    %cst_134 = arith.constant dense<0.000000e+00> : vector<8xf32>
    %390 = vector.multi_reduction <add>, %389, %cst_134 [1] : vector<8x8xf32> to vector<8xf32>
    %391 = vector.shape_cast %390 : vector<8xf32> to vector<8x1xf32>
    %392 = tpu.reciprocal %391 {approx = true} : vector<8x1xf32> -> vector<8x1xf32>
    %393 = vector.broadcast %392 : vector<8x1xf32> to vector<8x8xf32>
    %394 = arith.mulf %389, %393 : vector<8x8xf32>
    %cst_135 = arith.constant dense<0.000000e+00> : vector<8x8xf32>
    %395 = tpu.matmul %394, %378, %cst_135 {dimension_numbers = #tpu.dot_dimension_numbers<[1], [0], [0], [1], [0, 0, 1, 1], [], []>} : vector<8x8xf32>, vector<8x8xf32>, vector<8x8xf32> -> vector<8x8xf32>
    %396 = vector.extract_strided_slice %290 {offsets = [8, 8], sizes = [8, 8], strides = [1, 1]} : vector<16x32xf32> to vector<8x8xf32>
    %397 = vector.extract_strided_slice %291 {offsets = [8, 8], sizes = [8, 8], strides = [1, 1]} : vector<16x32xf32> to vector<8x8xf32>
    %398 = vector.extract_strided_slice %292 {offsets = [8, 8], sizes = [8, 8], strides = [1, 1]} : vector<16x32xf32> to vector<8x8xf32>
    %399 = tpu.transpose %397, [1, 0] : vector<8x8xf32> -> vector<8x8xf32>
    %cst_136 = arith.constant dense<0.000000e+00> : vector<8x8xf32>
    %400 = tpu.matmul %396, %399, %cst_136 {dimension_numbers = #tpu.dot_dimension_numbers<[1], [0], [0], [1], [0, 0, 1, 1], [], []>} : vector<8x8xf32>, vector<8x8xf32>, vector<8x8xf32> -> vector<8x8xf32>
    %cst_137 = arith.constant 0.353553385 : f32
    %401 = vector.broadcast %cst_137 : f32 to vector<8x8xf32>
    %402 = arith.mulf %400, %401 : vector<8x8xf32>
    %403 = vector.broadcast %375 : vector<1x8xf32> to vector<8x8xf32>
    %404 = arith.addf %402, %403 : vector<8x8xf32>
    %cst_138 = arith.constant dense<0xFF800000> : vector<8xf32>
    %405 = vector.multi_reduction <maximumf>, %404, %cst_138 [1] : vector<8x8xf32> to vector<8xf32>
    %406 = vector.shape_cast %405 : vector<8xf32> to vector<8x1xf32>
    %407 = vector.broadcast %406 : vector<8x1xf32> to vector<8x8xf32>
    %408 = arith.subf %404, %407 : vector<8x8xf32>
    %409 = math.exp %408 : vector<8x8xf32>
    %cst_139 = arith.constant dense<0.000000e+00> : vector<8xf32>
    %410 = vector.multi_reduction <add>, %409, %cst_139 [1] : vector<8x8xf32> to vector<8xf32>
    %411 = vector.shape_cast %410 : vector<8xf32> to vector<8x1xf32>
    %412 = tpu.reciprocal %411 {approx = true} : vector<8x1xf32> -> vector<8x1xf32>
    %413 = vector.broadcast %412 : vector<8x1xf32> to vector<8x8xf32>
    %414 = arith.mulf %409, %413 : vector<8x8xf32>
    %cst_140 = arith.constant dense<0.000000e+00> : vector<8x8xf32>
    %415 = tpu.matmul %414, %398, %cst_140 {dimension_numbers = #tpu.dot_dimension_numbers<[1], [0], [0], [1], [0, 0, 1, 1], [], []>} : vector<8x8xf32>, vector<8x8xf32>, vector<8x8xf32> -> vector<8x8xf32>
    %416 = vector.extract_strided_slice %290 {offsets = [8, 16], sizes = [8, 8], strides = [1, 1]} : vector<16x32xf32> to vector<8x8xf32>
    %417 = vector.extract_strided_slice %291 {offsets = [8, 16], sizes = [8, 8], strides = [1, 1]} : vector<16x32xf32> to vector<8x8xf32>
    %418 = vector.extract_strided_slice %292 {offsets = [8, 16], sizes = [8, 8], strides = [1, 1]} : vector<16x32xf32> to vector<8x8xf32>
    %419 = tpu.transpose %417, [1, 0] : vector<8x8xf32> -> vector<8x8xf32>
    %cst_141 = arith.constant dense<0.000000e+00> : vector<8x8xf32>
    %420 = tpu.matmul %416, %419, %cst_141 {dimension_numbers = #tpu.dot_dimension_numbers<[1], [0], [0], [1], [0, 0, 1, 1], [], []>} : vector<8x8xf32>, vector<8x8xf32>, vector<8x8xf32> -> vector<8x8xf32>
    %cst_142 = arith.constant 0.353553385 : f32
    %421 = vector.broadcast %cst_142 : f32 to vector<8x8xf32>
    %422 = arith.mulf %420, %421 : vector<8x8xf32>
    %423 = vector.broadcast %375 : vector<1x8xf32> to vector<8x8xf32>
    %424 = arith.addf %422, %423 : vector<8x8xf32>
    %cst_143 = arith.constant dense<0xFF800000> : vector<8xf32>
    %425 = vector.multi_reduction <maximumf>, %424, %cst_143 [1] : vector<8x8xf32> to vector<8xf32>
    %426 = vector.shape_cast %425 : vector<8xf32> to vector<8x1xf32>
    %427 = vector.broadcast %426 : vector<8x1xf32> to vector<8x8xf32>
    %428 = arith.subf %424, %427 : vector<8x8xf32>
    %429 = math.exp %428 : vector<8x8xf32>
    %cst_144 = arith.constant dense<0.000000e+00> : vector<8xf32>
    %430 = vector.multi_reduction <add>, %429, %cst_144 [1] : vector<8x8xf32> to vector<8xf32>
    %431 = vector.shape_cast %430 : vector<8xf32> to vector<8x1xf32>
    %432 = tpu.reciprocal %431 {approx = true} : vector<8x1xf32> -> vector<8x1xf32>
    %433 = vector.broadcast %432 : vector<8x1xf32> to vector<8x8xf32>
    %434 = arith.mulf %429, %433 : vector<8x8xf32>
    %cst_145 = arith.constant dense<0.000000e+00> : vector<8x8xf32>
    %435 = tpu.matmul %434, %418, %cst_145 {dimension_numbers = #tpu.dot_dimension_numbers<[1], [0], [0], [1], [0, 0, 1, 1], [], []>} : vector<8x8xf32>, vector<8x8xf32>, vector<8x8xf32> -> vector<8x8xf32>
    %436 = vector.extract_strided_slice %290 {offsets = [8, 24], sizes = [8, 8], strides = [1, 1]} : vector<16x32xf32> to vector<8x8xf32>
    %437 = vector.extract_strided_slice %291 {offsets = [8, 24], sizes = [8, 8], strides = [1, 1]} : vector<16x32xf32> to vector<8x8xf32>
    %438 = vector.extract_strided_slice %292 {offsets = [8, 24], sizes = [8, 8], strides = [1, 1]} : vector<16x32xf32> to vector<8x8xf32>
    %439 = tpu.transpose %437, [1, 0] : vector<8x8xf32> -> vector<8x8xf32>
    %cst_146 = arith.constant dense<0.000000e+00> : vector<8x8xf32>
    %440 = tpu.matmul %436, %439, %cst_146 {dimension_numbers = #tpu.dot_dimension_numbers<[1], [0], [0], [1], [0, 0, 1, 1], [], []>} : vector<8x8xf32>, vector<8x8xf32>, vector<8x8xf32> -> vector<8x8xf32>
    %cst_147 = arith.constant 0.353553385 : f32
    %441 = vector.broadcast %cst_147 : f32 to vector<8x8xf32>
    %442 = arith.mulf %440, %441 : vector<8x8xf32>
    %443 = vector.broadcast %375 : vector<1x8xf32> to vector<8x8xf32>
    %444 = arith.addf %442, %443 : vector<8x8xf32>
    %cst_148 = arith.constant dense<0xFF800000> : vector<8xf32>
    %445 = vector.multi_reduction <maximumf>, %444, %cst_148 [1] : vector<8x8xf32> to vector<8xf32>
    %446 = vector.shape_cast %445 : vector<8xf32> to vector<8x1xf32>
    %447 = vector.broadcast %446 : vector<8x1xf32> to vector<8x8xf32>
    %448 = arith.subf %444, %447 : vector<8x8xf32>
    %449 = math.exp %448 : vector<8x8xf32>
    %cst_149 = arith.constant dense<0.000000e+00> : vector<8xf32>
    %450 = vector.multi_reduction <add>, %449, %cst_149 [1] : vector<8x8xf32> to vector<8xf32>
    %451 = vector.shape_cast %450 : vector<8xf32> to vector<8x1xf32>
    %452 = tpu.reciprocal %451 {approx = true} : vector<8x1xf32> -> vector<8x1xf32>
    %453 = vector.broadcast %452 : vector<8x1xf32> to vector<8x8xf32>
    %454 = arith.mulf %449, %453 : vector<8x8xf32>
    %cst_150 = arith.constant dense<0.000000e+00> : vector<8x8xf32>
    %455 = tpu.matmul %454, %438, %cst_150 {dimension_numbers = #tpu.dot_dimension_numbers<[1], [0], [0], [1], [0, 0, 1, 1], [], []>} : vector<8x8xf32>, vector<8x8xf32>, vector<8x8xf32> -> vector<8x8xf32>
    %456 = tpu.concatenate %395, %415, %435, %455 in 1 : vector<8x8xf32>, vector<8x8xf32>, vector<8x8xf32>, vector<8x8xf32> -> vector<8x32xf32>
    %457 = tpu.concatenate %374, %456 in 0 : vector<8x32xf32>, vector<8x32xf32> -> vector<16x32xf32>
    %c1_151 = arith.constant 1 : index
    %c0_152 = arith.constant 0 : index
    %c0_153 = arith.constant 0 : index
    %458 = vector.load %arg6[%c1_151, %c0_152, %c0_153] : memref<2x32x32xf32, #tpu.memory_space<vmem>>, vector<1x32x32xf32>
    %459 = vector.shape_cast %458 : vector<1x32x32xf32> to vector<32x32xf32>
    %cst_154 = arith.constant dense<0.000000e+00> : vector<16x32xf32>
    %460 = tpu.matmul %457, %459, %cst_154 {dimension_numbers = #tpu.dot_dimension_numbers<[1], [0], [0], [1], [0, 0, 1, 1], [], []>} : vector<16x32xf32>, vector<32x32xf32>, vector<16x32xf32> -> vector<16x32xf32>
    %c1_155 = arith.constant 1 : index
    %c0_156 = arith.constant 0 : index
    %c0_157 = arith.constant 0 : index
    %461 = vector.load %arg7[%c1_155, %c0_156, %c0_157] : memref<2x1x32xf32, #tpu.memory_space<vmem>>, vector<1x1x32xf32>
    %462 = vector.shape_cast %461 : vector<1x1x32xf32> to vector<1x32xf32>
    %463 = vector.broadcast %462 : vector<1x32xf32> to vector<16x32xf32>
    %464 = arith.addf %460, %463 : vector<16x32xf32>
    %465 = arith.addf %464, %282 : vector<16x32xf32>
    %c1_158 = arith.constant 1 : index
    %c0_159 = arith.constant 0 : index
    %c0_160 = arith.constant 0 : index
    %466 = vector.load %arg8[%c1_158, %c0_159, %c0_160] : memref<2x1x32xf32, #tpu.memory_space<vmem>>, vector<1x1x32xf32>
    %467 = vector.shape_cast %466 : vector<1x1x32xf32> to vector<1x32xf32>
    %c1_161 = arith.constant 1 : index
    %c0_162 = arith.constant 0 : index
    %c0_163 = arith.constant 0 : index
    %468 = vector.load %arg9[%c1_161, %c0_162, %c0_163] : memref<2x1x32xf32, #tpu.memory_space<vmem>>, vector<1x1x32xf32>
    %469 = vector.shape_cast %468 : vector<1x1x32xf32> to vector<1x32xf32>
    %cst_164 = arith.constant dense<0.000000e+00> : vector<16xf32>
    %470 = vector.multi_reduction <add>, %465, %cst_164 [1] : vector<16x32xf32> to vector<16xf32>
    %471 = vector.shape_cast %470 : vector<16xf32> to vector<16x1xf32>
    %cst_165 = arith.constant 3.200000e+01 : f32
    %472 = vector.broadcast %cst_165 : f32 to vector<16x1xf32>
    %473 = arith.divf %471, %472 : vector<16x1xf32>
    %474 = vector.broadcast %473 : vector<16x1xf32> to vector<16x32xf32>
    %475 = arith.subf %465, %474 : vector<16x32xf32>
    %476 = arith.mulf %475, %475 : vector<16x32xf32>
    %cst_166 = arith.constant dense<0.000000e+00> : vector<16xf32>
    %477 = vector.multi_reduction <add>, %476, %cst_166 [1] : vector<16x32xf32> to vector<16xf32>
    %478 = vector.shape_cast %477 : vector<16xf32> to vector<16x1xf32>
    %cst_167 = arith.constant 3.200000e+01 : f32
    %479 = vector.broadcast %cst_167 : f32 to vector<16x1xf32>
    %480 = arith.divf %478, %479 : vector<16x1xf32>
    %cst_168 = arith.constant 9.99999996E-13 : f32
    %481 = vector.broadcast %cst_168 : f32 to vector<16x1xf32>
    %482 = arith.addf %480, %481 : vector<16x1xf32>
    %483 = math.rsqrt %482 : vector<16x1xf32>
    %484 = vector.broadcast %483 : vector<16x1xf32> to vector<16x32xf32>
    %485 = arith.mulf %475, %484 : vector<16x32xf32>
    %486 = vector.broadcast %467 : vector<1x32xf32> to vector<16x32xf32>
    %487 = arith.mulf %485, %486 : vector<16x32xf32>
    %488 = vector.broadcast %469 : vector<1x32xf32> to vector<16x32xf32>
    %489 = arith.addf %487, %488 : vector<16x32xf32>
    %c1_169 = arith.constant 1 : index
    %c0_170 = arith.constant 0 : index
    %c0_171 = arith.constant 0 : index
    %490 = vector.load %arg10[%c1_169, %c0_170, %c0_171] : memref<2x32x64xf32, #tpu.memory_space<vmem>>, vector<1x32x64xf32>
    %491 = vector.shape_cast %490 : vector<1x32x64xf32> to vector<32x64xf32>
    %cst_172 = arith.constant dense<0.000000e+00> : vector<16x64xf32>
    %492 = tpu.matmul %489, %491, %cst_172 {dimension_numbers = #tpu.dot_dimension_numbers<[1], [0], [0], [1], [0, 0, 1, 1], [], []>} : vector<16x32xf32>, vector<32x64xf32>, vector<16x64xf32> -> vector<16x64xf32>
    %c1_173 = arith.constant 1 : index
    %c0_174 = arith.constant 0 : index
    %c0_175 = arith.constant 0 : index
    %493 = vector.load %arg11[%c1_173, %c0_174, %c0_175] : memref<2x1x64xf32, #tpu.memory_space<vmem>>, vector<1x1x64xf32>
    %494 = vector.shape_cast %493 : vector<1x1x64xf32> to vector<1x64xf32>
    %495 = vector.broadcast %494 : vector<1x64xf32> to vector<16x64xf32>
    %496 = arith.addf %492, %495 : vector<16x64xf32>
    %cst_176 = arith.constant 5.000000e-01 : f32
    %497 = vector.broadcast %cst_176 : f32 to vector<16x64xf32>
    %498 = arith.mulf %497, %496 : vector<16x64xf32>
    %cst_177 = arith.constant 4.471500e-02 : f32
    %499 = vector.broadcast %cst_177 : f32 to vector<16x64xf32>
    %500 = arith.mulf %499, %496 : vector<16x64xf32>
    %501 = arith.mulf %500, %496 : vector<16x64xf32>
    %502 = arith.mulf %501, %496 : vector<16x64xf32>
    %503 = arith.addf %496, %502 : vector<16x64xf32>
    %cst_178 = arith.constant 0.797884583 : f32
    %504 = vector.broadcast %cst_178 : f32 to vector<16x64xf32>
    %505 = arith.mulf %504, %503 : vector<16x64xf32>
    %506 = math.tanh %505 : vector<16x64xf32>
    %cst_179 = arith.constant 1.000000e+00 : f32
    %507 = vector.broadcast %cst_179 : f32 to vector<16x64xf32>
    %508 = arith.addf %507, %506 : vector<16x64xf32>
    %509 = arith.mulf %498, %508 : vector<16x64xf32>
    %c1_180 = arith.constant 1 : index
    %c0_181 = arith.constant 0 : index
    %c0_182 = arith.constant 0 : index
    %510 = vector.load %arg12[%c1_180, %c0_181, %c0_182] : memref<2x64x32xf32, #tpu.memory_space<vmem>>, vector<1x64x32xf32>
    %511 = vector.shape_cast %510 : vector<1x64x32xf32> to vector<64x32xf32>
    %cst_183 = arith.constant dense<0.000000e+00> : vector<16x32xf32>
    %512 = tpu.matmul %509, %511, %cst_183 {dimension_numbers = #tpu.dot_dimension_numbers<[1], [0], [0], [1], [0, 0, 1, 1], [], []>} : vector<16x64xf32>, vector<64x32xf32>, vector<16x32xf32> -> vector<16x32xf32>
    %c1_184 = arith.constant 1 : index
    %c0_185 = arith.constant 0 : index
    %c0_186 = arith.constant 0 : index
    %513 = vector.load %arg13[%c1_184, %c0_185, %c0_186] : memref<2x1x32xf32, #tpu.memory_space<vmem>>, vector<1x1x32xf32>
    %514 = vector.shape_cast %513 : vector<1x1x32xf32> to vector<1x32xf32>
    %515 = vector.broadcast %514 : vector<1x32xf32> to vector<16x32xf32>
    %516 = arith.addf %512, %515 : vector<16x32xf32>
    %517 = arith.addf %516, %489 : vector<16x32xf32>
    %c1_187 = arith.constant 1 : index
    %c0_188 = arith.constant 0 : index
    %c0_189 = arith.constant 0 : index
    %518 = vector.load %arg14[%c1_187, %c0_188, %c0_189] : memref<2x1x32xf32, #tpu.memory_space<vmem>>, vector<1x1x32xf32>
    %519 = vector.shape_cast %518 : vector<1x1x32xf32> to vector<1x32xf32>
    %c1_190 = arith.constant 1 : index
    %c0_191 = arith.constant 0 : index
    %c0_192 = arith.constant 0 : index
    %520 = vector.load %arg15[%c1_190, %c0_191, %c0_192] : memref<2x1x32xf32, #tpu.memory_space<vmem>>, vector<1x1x32xf32>
    %521 = vector.shape_cast %520 : vector<1x1x32xf32> to vector<1x32xf32>
    %cst_193 = arith.constant dense<0.000000e+00> : vector<16xf32>
    %522 = vector.multi_reduction <add>, %517, %cst_193 [1] : vector<16x32xf32> to vector<16xf32>
    %523 = vector.shape_cast %522 : vector<16xf32> to vector<16x1xf32>
    %cst_194 = arith.constant 3.200000e+01 : f32
    %524 = vector.broadcast %cst_194 : f32 to vector<16x1xf32>
    %525 = arith.divf %523, %524 : vector<16x1xf32>
    %526 = vector.broadcast %525 : vector<16x1xf32> to vector<16x32xf32>
    %527 = arith.subf %517, %526 : vector<16x32xf32>
    %528 = arith.mulf %527, %527 : vector<16x32xf32>
    %cst_195 = arith.constant dense<0.000000e+00> : vector<16xf32>
    %529 = vector.multi_reduction <add>, %528, %cst_195 [1] : vector<16x32xf32> to vector<16xf32>
    %530 = vector.shape_cast %529 : vector<16xf32> to vector<16x1xf32>
    %cst_196 = arith.constant 3.200000e+01 : f32
    %531 = vector.broadcast %cst_196 : f32 to vector<16x1xf32>
    %532 = arith.divf %530, %531 : vector<16x1xf32>
    %cst_197 = arith.constant 9.99999996E-13 : f32
    %533 = vector.broadcast %cst_197 : f32 to vector<16x1xf32>
    %534 = arith.addf %532, %533 : vector<16x1xf32>
    %535 = math.rsqrt %534 : vector<16x1xf32>
    %536 = vector.broadcast %535 : vector<16x1xf32> to vector<16x32xf32>
    %537 = arith.mulf %527, %536 : vector<16x32xf32>
    %538 = vector.broadcast %519 : vector<1x32xf32> to vector<16x32xf32>
    %539 = arith.mulf %537, %538 : vector<16x32xf32>
    %540 = vector.broadcast %521 : vector<1x32xf32> to vector<16x32xf32>
    %541 = arith.addf %539, %540 : vector<16x32xf32>
    %542 = vector.extract_strided_slice %541 {offsets = [0, 0], sizes = [1, 32], strides = [1, 1]} : vector<16x32xf32> to vector<1x32xf32>
    %543 = vector.extract_strided_slice %541 {offsets = [8, 0], sizes = [1, 32], strides = [1, 1]} : vector<16x32xf32> to vector<1x32xf32>
    %544 = tpu.concatenate %542, %543 in 0 : vector<1x32xf32>, vector<1x32xf32> -> vector<2x32xf32>
    %c0_198 = arith.constant 0 : index
    %c0_199 = arith.constant 0 : index
    %545 = vector.load %arg16[%c0_198, %c0_199] : memref<32x32xf32, #tpu.memory_space<vmem>>, vector<32x32xf32>
    %cst_200 = arith.constant dense<0.000000e+00> : vector<2x32xf32>
    %546 = tpu.matmul %544, %545, %cst_200 {dimension_numbers = #tpu.dot_dimension_numbers<[1], [0], [0], [1], [0, 0, 1, 1], [], []>} : vector<2x32xf32>, vector<32x32xf32>, vector<2x32xf32> -> vector<2x32xf32>
    %c0_201 = arith.constant 0 : index
    %c0_202 = arith.constant 0 : index
    %547 = vector.load %arg17[%c0_201, %c0_202] : memref<1x32xf32, #tpu.memory_space<vmem>>, vector<1x32xf32>
    %548 = vector.broadcast %547 : vector<1x32xf32> to vector<2x32xf32>
    %549 = arith.addf %546, %548 : vector<2x32xf32>
    %550 = math.tanh %549 : vector<2x32xf32>
    %c0_203 = arith.constant 0 : index
    %c0_204 = arith.constant 0 : index
    %551 = vector.load %arg18[%c0_203, %c0_204] : memref<32x3xf32, #tpu.memory_space<vmem>>, vector<32x3xf32>
    %cst_205 = arith.constant dense<0.000000e+00> : vector<2x3xf32>
    %552 = tpu.matmul %550, %551, %cst_205 {dimension_numbers = #tpu.dot_dimension_numbers<[1], [0], [0], [1], [0, 0, 1, 1], [], []>} : vector<2x32xf32>, vector<32x3xf32>, vector<2x3xf32> -> vector<2x3xf32>
    %c0_206 = arith.constant 0 : index
    %c0_207 = arith.constant 0 : index
    %553 = vector.load %arg19[%c0_206, %c0_207] : memref<1x3xf32, #tpu.memory_space<vmem>>, vector<1x3xf32>
    %554 = vector.broadcast %553 : vector<1x3xf32> to vector<2x3xf32>
    %555 = arith.addf %552, %554 : vector<2x3xf32>
    %cst_208 = arith.constant dense<0xFF800000> : vector<2xf32>
    %556 = vector.multi_reduction <maximumf>, %555, %cst_208 [1] : vector<2x3xf32> to vector<2xf32>
    %557 = vector.shape_cast %556 : vector<2xf32> to vector<2x1xf32>
    %558 = vector.broadcast %557 : vector<2x1xf32> to vector<2x3xf32>
    %559 = arith.subf %555, %558 : vector<2x3xf32>
    %560 = math.exp %559 : vector<2x3xf32>
    %cst_209 = arith.constant dense<0.000000e+00> : vector<2xf32>
    %561 = vector.multi_reduction <add>, %560, %cst_209 [1] : vector<2x3xf32> to vector<2xf32>
    %562 = vector.shape_cast %561 : vector<2xf32> to vector<2x1xf32>
    %563 = vector.broadcast %562 : vector<2x1xf32> to vector<2x3xf32>
    %564 = arith.divf %560, %563 : vector<2x3xf32>
    %c0_210 = arith.constant 0 : index
    %c0_211 = arith.constant 0 : index
    %565 = vector.load %arg20[%c0_210, %c0_211] : memref<2x3xf32, #tpu.memory_space<vmem>>, vector<2x3xf32>
    tpu.vector_store %arg20[%c0_210, %c0_211], %564 {strides = array<i32>} : memref<2x3xf32, #tpu.memory_space<vmem>>, vector<2x3xf32>,
    return
  }
}

</mosaic_0001>

<bundles_post_ra>
// kernel: sentiment_classifier_forward.1
= control target key start
LH: loop header
LB: loop body
LE: loop exit
PB: predicated region body
PF: predicated region fallthrough
CT: control target
= control target key end

     0   :  { %s2903_s0 = inlined_call_operand.vmem [shape: f32[16,32], index: 0, kind: input, shape index: {}]   ;;  %s2904_s1 = inlined_call_operand.vmem [shape: f32[2,8], index: 1, kind: input, shape index: {}]   ;;  %s2905_s2 = inlined_call_operand.vmem [shape: f32[1,32], index: 2, kind: input, shape index: {}]   ;;  %s2906_s3 = inlined_call_operand.vmem [shape: f32[1,32], index: 3, kind: input, shape index: {}]   ;;  %s2907_s4 = inlined_call_operand.vmem [shape: f32[2,32,96], index: 4, kind: input, shape index: {}]   ;;  %s2908_s5 = inlined_call_operand.vmem [shape: f32[2,1,96], index: 5, kind: input, shape index: {}]   ;;  %s2909_s6 = inlined_call_operand.vmem [shape: f32[2,32,32], index: 6, kind: input, shape index: {}]   ;;  %s2910_s7 = inlined_call_operand.vmem [shape: f32[2,1,32], index: 7, kind: input, shape index: {}]   ;;  %s2911_s8 = inlined_call_operand.vmem [shape: f32[2,1,32], index: 8, kind: input, shape index: {}]   ;;  %s2912_s9 = inlined_call_operand.vmem [shape: f32[2,1,32], index: 9, kind: input, shape index: {}]   ;;  %s2913_s10 = inlined_call_operand.vmem [shape: f32[2,32,64], index: 10, kind: input, shape index: {}]   ;;  %s2914_s11 = inlined_call_operand.vmem [shape: f32[2,1,64], index: 11, kind: input, shape index: {}]   ;;  %s2915_s12 = inlined_call_operand.vmem [shape: f32[2,64,32], index: 12, kind: input, shape index: {}]   ;;  %s2916_s13 = inlined_call_operand.vmem [shape: f32[2,1,32], index: 13, kind: input, shape index: {}]   ;;  %s2917_s14 = inlined_call_operand.vmem [shape: f32[2,1,32], index: 14, kind: input, shape index: {}]   ;;  %s2918_s15 = inlined_call_operand.vmem [shape: f32[2,1,32], index: 15, kind: input, shape index: {}]   ;;  %s2919_s16 = inlined_call_operand.vmem [shape: f32[32,32], index: 16, kind: input, shape index: {}]   ;;  %s2920_s17 = inlined_call_operand.vmem [shape: f32[1,32], index: 17, kind: input, shape index: {}]   ;;  %s2921_s18 = inlined_call_operand.vmem [shape: f32[32,3], index: 18, kind: input, shape index: {}]   ;;  %s2922_s19 = inlined_call_operand.vmem [shape: f32[1,3], index: 19, kind: input, shape index: {}]   ;;  %s2923_s20 = inlined_call_operand.hbm [shape: f32[2,3], index: 20, kind: output, shape index: {}]  }
   0x1   :  { %2946 = sst [smem:[#allocation5_spill]] %s2903_s0 }
   0x2   :  { %2947 = sst [smem:[#allocation6_spill]] %s2904_s1 }
   0x3   :  { %2948 = sst [smem:[#allocation7_spill]] %s2905_s2 }
   0x4   :  { %2949 = sst [smem:[#allocation8_spill]] %s2906_s3 }
   0x5   :  { %2950 = sst [smem:[#allocation9_spill]] %s2907_s4 }
   0x6   :  { %s2951_s23 = sld [smem:[#allocation5_spill]]  ;;  %vm70_vm0 = vcmask 261120  }
   0xc   :  { %v66_v0 = vld [vmem:[%s2951_s23] sm:$0xff]  ;;  %v67_v1 = vld [vmem:[%s2951_s23 + $0x8] sm:$0xff] }
   0xd   :  { %v71_v2 = vsel %vm70_vm0, %v66_v0, 0.0  ;;  %v74_v3 = vsel %vm70_vm0, %v67_v1, 0.0 }
   0xe   :  { %72 = vadd.xlane.f32.xlu0 %v71_v2  ;;  %75 = vadd.xlane.f32.xlu1 %v74_v3 }
   0xf   :  { %25 = vsyncpa [#allocation3], 0  ;;  %v2217_v4 = vmov 32.0   ;;  %s2952_s26 = sld [smem:[#allocation9_spill]]  ;;  %v2383_v53 = vld [vmem:[%s2908_s5] ss:$0 sm:$0xff] }
  0x10   :  { %2091 = vrcp.f32 %v2217_v4  ;;  %s2953_s22 = sld [smem:[#allocation7_spill]]  ;;  %s2928_s27 = smov 120   ;;  %vm173_vm8 = vcmask 64512   ;;  %vm452_vm9 = vcmask 130048   ;;  %vm454_vm10 = vcmask 195584  }
  0x11   :  { %s2954_s2 = sld [smem:[#allocation8_spill]]  ;;  %s2219_s28 = smov 96   ;;  %vm901_vm14 = vcmask 523264  }
  0x12   :  { %s2220_s4 = smov 64   ;;  %s2936_s29 = smov 88  }
  0x13   :  { %s2934_s30 = smov 80   ;;  %s2932_s0 = smov 72  }
  0x14   :  { %s2926_s21 = smov 104   ;;  %s2955_s23 = sld [smem:[#allocation6_spill]] }
  0x15   :  { %v136_v21 = vld [vmem:[%s2952_s26 + $0x18] sm:$0xff]  ;;  %v135_v22 = vld [vmem:[%s2952_s26 + $0x10] sm:$0xff]  ;;  %v134_v23 = vld [vmem:[%s2952_s26 + $0x8] sm:$0xff]  ;;  %s2930_s24 = smov 112   ;;  %s2227_s25 = smov 40  }
  0x16   :  { %v2092_v5 = vpop.eup %2091  ;;  %159 = vmatpush.msra.mxu0 %v136_v21  ;;  %v133_v24 = vld [vmem:[%s2952_s26] sm:$0xff]  ;;  %s2940_s3 = smov 48   ;;  %s2938_s1 = smov 8  }
  0x17   :  { %v78_v6 = vmul.f32 32.0, %v2092_v5  ;;  %vm82_vm1 = vweird.f32 %v2092_v5  ;;  %v2071_v42 = vld [vmem:[%s2953_s22] ss:$0 sm:$0xff]  ;;  %s2942_s22 = smov 16  }
  0x18   :  { %160 = vmatpush.msra.mxu0 %v135_v22  ;;  %v2072_v46 = vld [vmem:[%s2954_s2] ss:$0 sm:$0xff]  ;;  %s2226_s2 = smov 56  }
  0x19   :  { %v79_v7 = vsub.f32 1.0, %v78_v6 }
  0x1a   :  { %161 = vmatpush.msra.mxu0 %v134_v23  ;;  %v2411_v62 = vld [vmem:[%s2955_s23] sm:$0x3]  ;;  %s2944_s23 = smov 24  }
  0x1b   :  { %v80_v8 = vmul.f32 %v2092_v5, %v79_v7  ;;  %v2414_v63 = vperm.slane %v2411_v62, 0 }
  0x1c   :  { %162 = vmatpush.msra.mxu0 %v133_v24 }
  0x1d   :  { %v81_v9 = vadd.f32 %v2092_v5, %v80_v8 }
  0x1f   :  { %v2346_v10 = vsel %vm82_vm1, %v2092_v5, %v81_v9 }
  0x81   :  { %v73_v11 = vpop.xlane.xlu0 %72  ;;  %v76_v12 = vpop.xlane.xlu1 %75 }
  0x82   :  { %v84_v13 = vmul.f32 %v2346_v10, %v73_v11  ;;  %v85_v14 = vmul.f32 %v2346_v10, %v76_v12 }
  0x84   :  { %v86_v15 = vsub.f32 %v66_v0, %v84_v13  ;;  %v87_v16 = vsub.f32 %v67_v1, %v85_v14 }
  0x86   :  { %v88_v17 = vmul.f32 %v86_v15, %v86_v15  ;;  %v89_v18 = vmul.f32 %v87_v16, %v87_v16 }
  0x88   :  { %v90_v19 = vsel %vm70_vm0, %v88_v17, 0.0  ;;  %v93_v20 = vsel %vm70_vm0, %v89_v18, 0.0 }
  0x89   :  { %91 = vadd.xlane.f32.xlu0 %v90_v19  ;;  %94 = vadd.xlane.f32.xlu1 %v93_v20 }
  0xfc   :  { %v92_v25 = vpop.xlane.xlu0 %91  ;;  %v95_v26 = vpop.xlane.xlu1 %94 }
  0xfd   :  { %v96_v27 = vmul.f32 %v92_v25, %v2346_v10  ;;  %v97_v28 = vmul.f32 %v95_v26, %v2346_v10 }
  0xff   :  { %v98_v29 = vadd.f32 1e-12, %v96_v27  ;;  %v99_v30 = vadd.f32 1e-12, %v97_v28 }
 0x101   :  { %2093 = vrsqrt.f32 %v98_v29  ;;  %vm116_vm2 = vweird.f32 %v99_v30  ;;  %vm106_vm5 = vweird.f32 %v98_v29 }
 0x102   :  { %2095 = vrsqrt.f32 %v99_v30 }
 0x107   :  { %v2094_v31 = vpop.eup %2093 }
 0x108   :  { %v2096_v32 = vpop.eup %2095  ;;  %v101_v33 = vmul.f32 %v2094_v31, %v98_v29  ;;  %vm107_vm4 = vweird.f32 %v2094_v31 }
 0x109   :  { %v111_v34 = vmul.f32 %v2096_v32, %v99_v30  ;;  %vm117_vm3 = vweird.f32 %v2096_v32  ;;  %vm108_vm7 = vmor %vm106_vm5, %vm107_vm4 }
 0x10a   :  { %v102_v35 = vmul.f32 %v2094_v31, %v101_v33  ;;  %vm118_vm6 = vmor %vm116_vm2, %vm117_vm3 }
 0x10b   :  { %v112_v36 = vmul.f32 %v2096_v32, %v111_v34 }
 0x10c   :  { %v103_v37 = vmul.f32 0.5, %v102_v35 }
 0x10d   :  { %v113_v38 = vmul.f32 0.5, %v112_v36 }
 0x10e   :  { %v104_v39 = vsub.f32 1.5, %v103_v37 }
 0x10f   :  { %v114_v40 = vsub.f32 1.5, %v113_v38 }
 0x110   :  { %v105_v41 = vmul.f32 %v2094_v31, %v104_v39 }
 0x111   :  { %v115_v43 = vmul.f32 %v2096_v32, %v114_v40 }
 0x112   :  { %v109_v44 = vsel %vm108_vm7, %v2094_v31, %v105_v41 }
 0x113   :  { %v120_v45 = vmul.f32 %v109_v44, %v86_v15  ;;  %v119_v47 = vsel %vm118_vm6, %v2096_v32, %v115_v43 }
 0x114   :  { %v121_v49 = vmul.f32 %v119_v47, %v87_v16 }
 0x115   :  { %v125_v48 = vmul.f32 %v2071_v42, %v120_v45 }
 0x116   :  { %v126_v51 = vmul.f32 %v2071_v42, %v121_v49 }
 0x117   :  { %v2372_v50 = vadd.f32 %v2072_v46, %v125_v48 }
 0x118   :  { %v2376_v52 = vadd.f32 %v2072_v46, %v126_v51 }
 0x119   :  { %1961 = vmatmul.msk.f32.vlgmr.msra.gmra.mxu0 %vm70_vm0, %v2372_v50 }
 0x121   :  { %1962 = vmatmul.msk.f32.gmra.mxu0 %vm70_vm0, %v2376_v52 }
 0x196   :  { %v164_v54 = vpop.f32.mrf.mxu0 }
 0x197   :  { %v2386_v55 = vadd.f32 %v2383_v53, %v164_v54 }
 0x199   :  { %238 = vrot.lane.b32.xlu0 %v2386_v55, %s2928_s27  ;;  %171 = vrot.lane.b32.xlu2 %v2386_v55, %s2219_s28 }
 0x19e   :  { %v167_v61 = vpop.f32.mrf.mxu0 }
 0x19f   :  { %v2436_v33 = vadd.f32 %v2383_v53, %v167_v61 }
 0x1a1   :  { %212 = vrot.lane.b32.xlu0 %v2386_v55, %s2220_s4  ;;  %240 = vrot.lane.b32.xlu2 %v2386_v55, %s2936_s29 }
 0x1a9   :  { %307 = vrot.lane.b32.xlu0 %v2386_v55, %s2934_s30 }
 0x1b1   :  { %374 = vrot.lane.b32.xlu0 %v2386_v55, %s2932_s0 }
 0x1b9   :  { %372 = vrot.lane.b32.xlu0 %v2386_v55, %s2926_s21 }
 0x1f3   :  { %v172_v56 = vpop.permute.xlu2 %171 }
 0x1f4   :  { %1963 = vmatpush.xpose.msk.msrb.mxu0 %vm173_vm8, %v172_v56 }
 0x1f7   :  { %1964 = vmatmul.msk.f32.vlgmr.msrb.gmra.mxu0 %vm173_vm8, %v2386_v55 }
 0x1fb   :  { %v241_v57 = vpop.permute.xlu2 %240 }
 0x1fc   :  { %1966 = vmatpush.xpose.msk.msra.mxu3 %vm173_vm8, %v241_v57 }
 0x20b   :  { %v239_v58 = vpop.permute.xlu0 %238 }
 0x20c   :  { %1967 = vmatmul.msk.f32.vlgmr.msra.gmra.mxu3 %vm173_vm8, %v239_v58 }
 0x213   :  { %v213_v59 = vpop.permute.xlu0 %212 }
 0x214   :  { %233 = vmatpush.msra.mxu2 %v213_v59 }
 0x21b   :  { %v308_v60 = vpop.permute.xlu0 %307 }
 0x21c   :  { %1969 = vmatpush.xpose.msk.msra.mxu1 %vm173_vm8, %v308_v60 }
 0x223   :  { %v375_v29 = vpop.permute.xlu0 %374 }
 0x22b   :  { %v373_v32 = vpop.permute.xlu0 %372 }
 0x274   :  { %v195_v0 = vpop.f32.mrf.mxu0 }
 0x275   :  { %v198_v1 = vmul.f32 0.35355338, %v195_v0 }
 0x277   :  { %v200_v2 = vadd.f32 %v2414_v63, %v198_v1 }
 0x279   :  { %v201_v3 = vsel %vm173_vm8, %v200_v2, -inf }
 0x27a   :  { %202 = vmax.xlane.f32.xlu1 %v201_v3 }
 0x28f   :  { %v263_v4 = vpop.f32.mrf.mxu3 }
 0x290   :  { %v266_v5 = vmul.f32 0.35355338, %v263_v4 }
 0x292   :  { %v267_v6 = vadd.f32 %v266_v5, %v2414_v63 }
 0x294   :  { %v268_v7 = vsel %vm173_vm8, %v267_v6, -inf }
 0x295   :  { %269 = vmax.xlane.f32.xlu2 %v268_v7 }
 0x2ad   :  { %305 = vrot.lane.b32.xlu2 %v2386_v55, %s2930_s24 }
 0x2ed   :  { %v203_v8 = vpop.xlane.xlu1 %202 }
 0x2ee   :  { %v204_v9 = vsub.f32 %v200_v2, %v203_v8 }
 0x2f0   :  { %v205_v11 = vmul.f32 1.442695, %v204_v9 }
 0x2f2   :  { %2097 = vpow2.f32 %v205_v11 }
 0x2f8   :  { %v2098_v12 = vpop.eup %2097 }
 0x2f9   :  { %v207_v13 = vsel %vm173_vm8, %v2098_v12, 0.0 }
 0x2fa   :  { %208 = vadd.xlane.f32.xlu1 %v207_v13 }
 0x308   :  { %v270_v14 = vpop.xlane.xlu2 %269 }
 0x309   :  { %v271_v15 = vsub.f32 %v267_v6, %v270_v14  ;;  %v2474_v6 = vperm.slane %v2411_v62, 1 }
 0x30b   :  { %v272_v16 = vmul.f32 1.442695, %v271_v15 }
 0x30d   :  { %2099 = vpow2.f32 %v272_v16 }
 0x310   :  { %v306_v17 = vpop.permute.xlu2 %305 }
 0x311   :  { %1970 = vmatmul.msk.f32.vlgmr.msra.gmra.mxu1 %vm173_vm8, %v306_v17 }
 0x313   :  { %v2100_v18 = vpop.eup %2099 }
 0x314   :  { %v274_v19 = vsel %vm173_vm8, %v2100_v18, 0.0 }
 0x315   :  { %275 = vadd.xlane.f32.xlu1 %v274_v19 }
 0x32e   :  { %279 = vrot.lane.b32.xlu1 %v2386_v55, %s2226_s2 }
 0x36d   :  { %v209_v20 = vpop.xlane.xlu1 %208 }
 0x36e   :  { %2101 = vrcp.f32 %v209_v20 }
 0x374   :  { %v2102_v21 = vpop.eup %2101 }
 0x375   :  { %v211_v22 = vmul.f32 %v2102_v21, %v2098_v12 }
 0x377   :  { %1965 = vmatmul.msk.f32.vlgmr.msra.gmra.mxu2 %vm173_vm8, %v211_v22 }
 0x388   :  { %v276_v27 = vpop.xlane.xlu1 %275 }
 0x389   :  { %2103 = vrcp.f32 %v276_v27  ;;  %v740_v27 = vld [vmem:[%s2909_s6 + $0x8] sm:$0xff] }
 0x38e   :  { %v330_v23 = vpop.f32.mrf.mxu1 }
 0x38f   :  { %v333_v24 = vmul.f32 0.35355338, %v330_v23  ;;  %v2104_v28 = vpop.eup %2103 }
 0x390   :  { %v278_v31 = vmul.f32 %v2104_v28, %v2100_v18 }
 0x391   :  { %v334_v25 = vadd.f32 %v333_v24, %v2414_v63  ;;  %v742_v24 = vld [vmem:[%s2909_s6 + $0x18] sm:$0xff] }
 0x393   :  { %v335_v26 = vsel %vm173_vm8, %v334_v25, -inf }
 0x394   :  { %336 = vmax.xlane.f32.xlu1 %v335_v26 }
 0x3a0   :  { %v280_v30 = vpop.permute.xlu1 %279 }
 0x3a1   :  { %300 = vmatpush.msrb.mxu2 %v280_v30 }
 0x3a2   :  { %1968 = vmatmul.msk.f32.vlgmr.msrb.gmra.mxu2 %vm173_vm8, %v278_v31 }
 0x3a3   :  { %1972 = vmatpush.xpose.msk.msra.mxu2 %vm173_vm8, %v375_v29 }
 0x3aa   :  { %1973 = vmatmul.msk.f32.vlgmr.msra.gmra.mxu2 %vm173_vm8, %v373_v32 }
 0x3ad   :  { %413 = vrot.lane.b32.xlu1 %v2386_v55, %s2227_s25 }
 0x3b5   :  { %592 = vrot.lane.b32.xlu1 %v2436_v33, %s2934_s30 }
 0x3fa   :  { %v2441_v39 = vpop.f32.mrf.mxu2 }
 0x407   :  { %v337_v34 = vpop.xlane.xlu1 %336 }
 0x408   :  { %v338_v35 = vsub.f32 %v334_v25, %v337_v34  ;;  %v741_v25 = vld [vmem:[%s2909_s6 + $0x10] sm:$0xff] }
 0x40a   :  { %v339_v36 = vmul.f32 1.442695, %v338_v35 }
 0x40c   :  { %2105 = vpow2.f32 %v339_v36 }
 0x412   :  { %v2106_v37 = vpop.eup %2105 }
 0x413   :  { %v341_v38 = vsel %vm173_vm8, %v2106_v37, 0.0 }
 0x414   :  { %342 = vadd.xlane.f32.xlu2 %v341_v38 }
 0x41f   :  { %v414_v40 = vpop.permute.xlu1 %413 }
 0x420   :  { %434 = vmatpush.msrb.mxu1 %v414_v40 }
 0x425   :  { %v302_v41 = vpop.f32.mrf.mxu2 }
 0x427   :  { %v593_v58 = vpop.permute.xlu1 %592 }
 0x42c   :  { %457 = vrot.lane.b32.xlu2 %v2436_v33, %s2219_s28 }
 0x42d   :  { %v397_v42 = vpop.f32.mrf.mxu2 }
 0x42e   :  { %v400_v43 = vmul.f32 0.35355338, %v397_v42 }
 0x430   :  { %v401_v44 = vadd.f32 %v400_v43, %v2414_v63 }
 0x432   :  { %v402_v45 = vsel %vm173_vm8, %v401_v44, -inf }
 0x433   :  { %403 = vmax.xlane.f32.xlu0 %v402_v45 }
 0x434   :  { %590 = vrot.lane.b32.xlu2 %v2436_v33, %s2930_s24  ;;  %s2958_s24 = smov 72  }
 0x447   :  { %346 = vrot.lane.b32.xlu0 %v2386_v55, %s2940_s3 }
 0x44f   :  { %525 = vrot.lane.b32.xlu0 %v2436_v33, %s2936_s29 }
 0x457   :  { %523 = vrot.lane.b32.xlu0 %v2436_v33, %s2928_s27 }
 0x45f   :  { %659 = vrot.lane.b32.xlu0 %v2436_v33, %s2932_s0  ;;  %s2956_s0 = smov 88  }
 0x467   :  { %440 = vrot.lane.b32.xlu0 %v302_v41, %s2938_s1  ;;  %v739_v41 = vld [vmem:[%s2909_s6] sm:$0xff] }
 0x487   :  { %v343_v49 = vpop.xlane.xlu2 %342 }
 0x48f   :  { %v458_v57 = vpop.permute.xlu2 %457 }
 0x497   :  { %v591_v61 = vpop.permute.xlu2 %590 }
 0x4a6   :  { %v404_v46 = vpop.xlane.xlu0 %403 }
 0x4a7   :  { %v405_v47 = vsub.f32 %v401_v44, %v404_v46 }
 0x4a9   :  { %v406_v48 = vmul.f32 1.442695, %v405_v47 }
 0x4ab   :  { %2107 = vpow2.f32 %v406_v48 }
 0x4ac   :  { %2109 = vrcp.f32 %v343_v49 }
 0x4b1   :  { %v2108_v51 = vpop.eup %2107 }
 0x4b2   :  { %v408_v53 = vsel %vm173_vm8, %v2108_v51, 0.0  ;;  %v2110_v54 = vpop.eup %2109 }
 0x4b3   :  { %409 = vadd.xlane.f32.xlu1 %v408_v53  ;;  %v345_v56 = vmul.f32 %v2110_v54, %v2106_v37 }
 0x4b9   :  { %v347_v55 = vpop.permute.xlu0 %346 }
 0x4ba   :  { %367 = vmatpush.msrb.mxu3 %v347_v55 }
 0x4bb   :  { %1971 = vmatmul.msk.f32.vlgmr.msrb.gmra.mxu3 %vm173_vm8, %v345_v56 }
 0x4bc   :  { %1975 = vmatpush.xpose.msk.msra.mxu3 %vm173_vm8, %v458_v57 }
 0x4c0   :  { %1981 = vmatpush.xpose.msk.msrb.mxu3 %vm173_vm8, %v593_v58 }
 0x4c1   :  { %v526_v59 = vpop.permute.xlu0 %525 }
 0x4c2   :  { %1978 = vmatpush.xpose.msk.msrb.mxu2 %vm173_vm8, %v526_v59 }
 0x4c3   :  { %1976 = vmatmul.msk.f32.vlgmr.msra.gmra.mxu3 %vm173_vm8, %v2436_v33 }
 0x4c4   :  { %765 = vmatpush.msra.mxu3 %v742_v24  ;;  %v837_v24 = vld [vmem:[%s2913_s10 + $0x18] sm:$0xff] }
 0x4c6   :  { %766 = vmatpush.msra.mxu3 %v741_v25  ;;  %v836_v25 = vld [vmem:[%s2913_s10 + $0x10] sm:$0xff] }
 0x4c8   :  { %767 = vmatpush.msra.mxu3 %v740_v27  ;;  %v834_v27 = vld [vmem:[%s2913_s10] sm:$0xff] }
 0x4c9   :  { %v524_v60 = vpop.permute.xlu0 %523 }
 0x4ca   :  { %1979 = vmatmul.msk.f32.vlgmr.msrb.gmra.mxu2 %vm173_vm8, %v524_v60  ;;  %768 = vmatpush.msra.mxu3 %v739_v41 }
 0x4cb   :  { %1982 = vmatmul.msk.f32.vlgmr.msrb.gmra.mxu3 %vm173_vm8, %v591_v61  ;;  %v2518_v61 = vld [vmem:[%s2910_s7] ss:$0 sm:$0xff] }
 0x4cc   :  { %657 = vrot.lane.b32.xlu1 %v2436_v33, %s2926_s21  ;;  %s2957_s21 = smov 80  }
 0x4d1   :  { %v660_v0 = vpop.permute.xlu0 %659 }
 0x4d2   :  { %1984 = vmatpush.xpose.msk.msra.mxu2 %vm173_vm8, %v660_v0 }
 0x4d9   :  { %v441_v62 = vpop.permute.xlu0 %440 }
 0x4da   :  { %v451_v42 = vsel %vm173_vm8, %v2441_v39, %v441_v62 }
 0x526   :  { %v410_v1 = vpop.xlane.xlu1 %409 }
 0x527   :  { %2111 = vrcp.f32 %v410_v1 }
 0x52d   :  { %v2112_v2 = vpop.eup %2111 }
 0x52e   :  { %v412_v3 = vmul.f32 %v2112_v2, %v2108_v51 }
 0x530   :  { %1974 = vmatmul.msk.f32.vlgmr.msrb.gmra.mxu1 %vm173_vm8, %v412_v3 }
 0x53e   :  { %v369_v4 = vpop.f32.mrf.mxu3  ;;  %v658_v5 = vpop.permute.xlu1 %657 }
 0x53f   :  { %444 = vrot.lane.b32.xlu2 %v369_v4, %s2942_s22  ;;  %1985 = vmatmul.msk.f32.vlgmr.msra.gmra.mxu2 %vm173_vm8, %v658_v5 }
 0x546   :  { %v480_v7 = vpop.f32.mrf.mxu3 }
 0x547   :  { %v483_v8 = vmul.f32 0.35355338, %v480_v7 }
 0x549   :  { %v485_v9 = vadd.f32 %v2474_v6, %v483_v8 }
 0x54b   :  { %v486_v11 = vsel %vm173_vm8, %v485_v9, -inf }
 0x54c   :  { %487 = vmax.xlane.f32.xlu0 %v486_v11 }
 0x54d   :  { %v548_v12 = vpop.f32.mrf.mxu2 }
 0x54e   :  { %v551_v13 = vmul.f32 0.35355338, %v548_v12  ;;  %v615_v29 = vpop.f32.mrf.mxu3 }
 0x54f   :  { %v618_v30 = vmul.f32 0.35355338, %v615_v29 }
 0x550   :  { %v552_v14 = vadd.f32 %v551_v13, %v2474_v6 }
 0x551   :  { %v619_v32 = vadd.f32 %v618_v30, %v2474_v6 }
 0x552   :  { %v553_v15 = vsel %vm173_vm8, %v552_v14, -inf }
 0x553   :  { %v620_v34 = vsel %vm173_vm8, %v619_v32, -inf }
 0x568   :  { %554 = vmax.xlane.f32.xlu2 %v553_v15 }
 0x599   :  { %v445_v31 = vpop.permute.xlu2 %444 }
 0x59a   :  { %v453_v43 = vsel %vm452_vm9, %v451_v42, %v445_v31  ;;  %v2552_v42 = vld [vmem:[%s2912_s9] ss:$0 sm:$0xff] }
 0x5ad   :  { %v436_v16 = vpop.f32.mrf.mxu1 }
 0x5ae   :  { %448 = vrot.lane.b32.xlu1 %v436_v16, %s2944_s23 }
 0x5bf   :  { %v488_v17 = vpop.xlane.xlu0 %487 }
 0x5c0   :  { %v489_v18 = vsub.f32 %v485_v9, %v488_v17 }
 0x5c2   :  { %v490_v19 = vmul.f32 1.442695, %v489_v18  ;;  %v682_v20 = vpop.f32.mrf.mxu2 }
 0x5c3   :  { %v685_v21 = vmul.f32 0.35355338, %v682_v20 }
 0x5c4   :  { %2113 = vpow2.f32 %v490_v19 }
 0x5c5   :  { %v686_v22 = vadd.f32 %v685_v21, %v2474_v6 }
 0x5c7   :  { %v687_v23 = vsel %vm173_vm8, %v686_v22, -inf }
 0x5c8   :  { %688 = vmax.xlane.f32.xlu2 %v687_v23 }
 0x5ca   :  { %v2114_v26 = vpop.eup %2113 }
 0x5cb   :  { %v492_v28 = vsel %vm173_vm8, %v2114_v26, 0.0 }
 0x5cc   :  { %493 = vadd.xlane.f32.xlu0 %v492_v28 }
 0x5d8   :  { %621 = vmax.xlane.f32.xlu1 %v620_v34 }
 0x5db   :  { %v555_v35 = vpop.xlane.xlu2 %554 }
 0x5dc   :  { %v556_v36 = vsub.f32 %v552_v14, %v555_v35 }
 0x5de   :  { %v557_v37 = vmul.f32 1.442695, %v556_v36 }
 0x5e0   :  { %2115 = vpow2.f32 %v557_v37  ;;  %497 = vrot.lane.b32.xlu0 %v2436_v33, %s2220_s4 }
 0x5e6   :  { %v2116_v38 = vpop.eup %2115 }
 0x5e7   :  { %v559_v40 = vsel %vm173_vm8, %v2116_v38, 0.0 }
 0x5e8   :  { %698 = vrot.lane.b32.xlu0 %v2436_v33, %s2227_s25  ;;  %560 = vadd.xlane.f32.xlu1 %v559_v40 }
 0x620   :  { %v449_v44 = vpop.permute.xlu1 %448 }
 0x621   :  { %v455_v45 = vsel %vm454_vm10, %v453_v43, %v449_v44 }
 0x622   :  { %1987 = vmatmul.msk.f32.vlgmr.msra.gmra.mxu3 %vm70_vm0, %v455_v45 }
 0x63b   :  { %v689_v46 = vpop.xlane.xlu2 %688 }
 0x63c   :  { %v690_v47 = vsub.f32 %v686_v22, %v689_v46 }
 0x63e   :  { %v691_v48 = vmul.f32 1.442695, %v690_v47 }
 0x63f   :  { %v494_v51 = vpop.xlane.xlu0 %493 }
 0x640   :  { %2117 = vpow2.f32 %v691_v48 }
 0x641   :  { %2119 = vrcp.f32 %v494_v51 }
 0x646   :  { %v2118_v49 = vpop.eup %2117 }
 0x647   :  { %v693_v53 = vsel %vm173_vm8, %v2118_v49, 0.0  ;;  %v2120_v56 = vpop.eup %2119 }
 0x648   :  { %694 = vadd.xlane.f32.xlu1 %v693_v53  ;;  %v496_v57 = vmul.f32 %v2120_v56, %v2114_v26  ;;  %v835_v26 = vld [vmem:[%s2913_s10 + $0x8] sm:$0xff]  ;;  %v896_v53 = vld [vmem:[%s2915_s12 + $0x38] sm:$0xff] }
 0x649   :  { %916 = vmatpush.msrb.mxu2 %v896_v53  ;;  %v892_v56 = vld [vmem:[%s2915_s12 + $0x18] sm:$0xff] }
 0x64b   :  { %v622_v54 = vpop.xlane.xlu1 %621 }
 0x64c   :  { %v623_v55 = vsub.f32 %v619_v32, %v622_v54  ;;  %v895_v54 = vld [vmem:[%s2915_s12 + $0x30] sm:$0xff] }
 0x64d   :  { %917 = vmatpush.msrb.mxu2 %v895_v54 }
 0x64e   :  { %v624_v39 = vmul.f32 1.442695, %v623_v55  ;;  %v894_v55 = vld [vmem:[%s2915_s12 + $0x28] sm:$0xff] }
 0x64f   :  { %918 = vmatpush.msrb.mxu2 %v894_v55 }
 0x650   :  { %2121 = vpow2.f32 %v624_v39  ;;  %v893_v39 = vld [vmem:[%s2915_s12 + $0x20] sm:$0xff] }
 0x651   :  { %919 = vmatpush.msrb.mxu2 %v893_v39 }
 0x652   :  { %v498_v58 = vpop.permute.xlu0 %497 }
 0x653   :  { %518 = vmatpush.msra.mxu0 %v498_v58  ;;  %920 = vmatpush.msrb.mxu2 %v892_v56  ;;  %v890_v58 = vld [vmem:[%s2915_s12 + $0x8] sm:$0xff]  ;;  %v2626_v56 = vld [vmem:[%s2917_s14] ss:$0 sm:$0xff] }
 0x654   :  { %1977 = vmatmul.msk.f32.vlgmr.msra.gmra.mxu0 %vm173_vm8, %v496_v57  ;;  %v891_v57 = vld [vmem:[%s2915_s12 + $0x10] sm:$0xff] }
 0x655   :  { %921 = vmatpush.msrb.mxu2 %v891_v57 }
 0x656   :  { %v2122_v59 = vpop.eup %2121 }
 0x657   :  { %v626_v60 = vsel %vm173_vm8, %v2122_v59, 0.0  ;;  %922 = vmatpush.msrb.mxu2 %v890_v58 }
 0x658   :  { %627 = vadd.xlane.f32.xlu2 %v626_v60  ;;  %v2588_v60 = vld [vmem:[%s2914_s11] ss:$0 sm:$0xff] }
 0x65a   :  { %v699_v14 = vpop.permute.xlu0 %698 }
 0x65b   :  { %v561_v4 = vpop.xlane.xlu1 %560 }
 0x65c   :  { %2123 = vrcp.f32 %v561_v4 }
 0x661   :  { %631 = vrot.lane.b32.xlu1 %v2436_v33, %s2940_s3  ;;  %s2959_s3 = smov 112  }
 0x662   :  { %v2124_v8 = vpop.eup %2123 }
 0x663   :  { %v563_v9 = vmul.f32 %v2124_v8, %v2116_v38  ;;  %v2547_v38 = vld [vmem:[%s2911_s8] ss:$0 sm:$0xff] }
 0x670   :  { %564 = vrot.lane.b32.xlu2 %v2436_v33, %s2226_s2 }
 0x6a5   :  { %v770_v0 = vpop.f32.mrf.mxu3 }
 0x6a6   :  { %v771_v1 = vadd.f32 %v2518_v61, %v770_v0 }
 0x6a8   :  { %v776_v2 = vadd.f32 %v771_v1, %v2372_v50 }
 0x6aa   :  { %v780_v3 = vsel %vm70_vm0, %v776_v2, 0.0 }
 0x6ab   :  { %781 = vadd.xlane.f32.xlu0 %v780_v3 }
 0x6bb   :  { %v695_v5 = vpop.xlane.xlu1 %694 }
 0x6cb   :  { %v628_v7 = vpop.xlane.xlu2 %627 }
 0x6cc   :  { %2125 = vrcp.f32 %v628_v7 }
 0x6cd   :  { %2127 = vrcp.f32 %v695_v5 }
 0x6d1   :  { %v520_v20 = vpop.f32.mrf.mxu0 }
 0x6d2   :  { %v2126_v33 = vpop.eup %2125 }
 0x6d3   :  { %v630_v11 = vmul.f32 %v2126_v33, %v2122_v59  ;;  %v565_v12 = vpop.permute.xlu2 %564  ;;  %v632_v13 = vpop.permute.xlu1 %631  ;;  %v889_v59 = vld [vmem:[%s2915_s12] sm:$0xff] }
 0x6d4   :  { %585 = vmatpush.msra.mxu1 %v565_v12  ;;  %652 = vmatpush.msrb.mxu0 %v632_v13  ;;  %v2128_v50 = vpop.eup %2127 }
 0x6d5   :  { %1980 = vmatmul.msk.f32.vlgmr.msra.gmra.mxu1 %vm173_vm8, %v563_v9  ;;  %1983 = vmatmul.msk.f32.vlgmr.msrb.gmra.mxu0 %vm173_vm8, %v630_v11  ;;  %v697_v15 = vmul.f32 %v2128_v50, %v2118_v49 }
 0x6d6   :  { %719 = vmatpush.msrb.mxu1 %v699_v14  ;;  %860 = vmatpush.msra.mxu0 %v837_v24 }
 0x6d7   :  { %923 = vmatpush.msrb.mxu2 %v889_v59  ;;  %v2631_v59 = vld [vmem:[%s2918_s15] ss:$0 sm:$0xff] }
 0x6d8   :  { %861 = vmatpush.msra.mxu0 %v836_v25 }
 0x6da   :  { %862 = vmatpush.msra.mxu0 %v835_v26 }
 0x6dc   :  { %863 = vmatpush.msra.mxu0 %v834_v27 }
 0x6dd   :  { %1986 = vmatmul.msk.f32.vlgmr.msrb.gmra.mxu1 %vm173_vm8, %v697_v15  ;;  %v2598_v15 = vld [vmem:[%s2916_s13] ss:$0 sm:$0xff] }
 0x71e   :  { %v782_v16 = vpop.xlane.xlu0 %781 }
 0x71f   :  { %v786_v62 = vmul.f32 %v782_v16, %v2346_v10 }
 0x721   :  { %v788_v17 = vsub.f32 %v776_v2, %v786_v62 }
 0x723   :  { %v790_v18 = vmul.f32 %v788_v17, %v788_v17 }
 0x725   :  { %v792_v19 = vsel %vm70_vm0, %v790_v18, 0.0 }
 0x726   :  { %793 = vadd.xlane.f32.xlu2 %v792_v19 }
 0x752   :  { %v587_v21 = vpop.f32.mrf.mxu1  ;;  %v654_v22 = vpop.f32.mrf.mxu0 }
 0x753   :  { %725 = vrot.lane.b32.xlu1 %v587_v21, %s2938_s1 }
 0x75a   :  { %v721_v23 = vpop.f32.mrf.mxu1 }
 0x75b   :  { %729 = vrot.lane.b32.xlu1 %v654_v22, %s2942_s22  ;;  %s2961_s22 = smov 104  }
 0x763   :  { %733 = vrot.lane.b32.xlu1 %v721_v23, %s2944_s23 }
 0x799   :  { %v794_v28 = vpop.xlane.xlu2 %793 }
 0x79a   :  { %v798_v29 = vmul.f32 %v794_v28, %v2346_v10 }
 0x79c   :  { %v800_v30 = vadd.f32 1e-12, %v798_v29 }
 0x79e   :  { %2129 = vrsqrt.f32 %v800_v30  ;;  %vm808_vm12 = vweird.f32 %v800_v30 }
 0x7a4   :  { %v2130_v31 = vpop.eup %2129 }
 0x7a5   :  { %v803_v32 = vmul.f32 %v2130_v31, %v800_v30  ;;  %vm809_vm11 = vweird.f32 %v2130_v31 }
 0x7a6   :  { %vm810_vm13 = vmor %vm808_vm12, %vm809_vm11 }
 0x7a7   :  { %v804_v34 = vmul.f32 %v2130_v31, %v803_v32 }
 0x7a9   :  { %v805_v35 = vmul.f32 0.5, %v804_v34 }
 0x7ab   :  { %v806_v36 = vsub.f32 1.5, %v805_v35 }
 0x7ad   :  { %v807_v37 = vmul.f32 %v2130_v31, %v806_v36 }
 0x7af   :  { %v811_v40 = vsel %vm810_vm13, %v2130_v31, %v807_v37 }
 0x7b0   :  { %v822_v41 = vmul.f32 %v811_v40, %v788_v17 }
 0x7b2   :  { %v827_v43 = vmul.f32 %v2547_v38, %v822_v41 }
 0x7b4   :  { %v832_v44 = vadd.f32 %v2552_v42, %v827_v43 }
 0x7b6   :  { %1989 = vmatmul.msk.f32.vlgmr.msra.gmra.mxu0 %vm70_vm0, %v832_v44 }
 0x7c5   :  { %v726_v45 = vpop.permute.xlu1 %725 }
 0x7c6   :  { %v736_v47 = vsel %vm173_vm8, %v520_v20, %v726_v45  ;;  %v1995_v45 = vld [vmem:[%s2952_s26 + $0x30] sm:$0xff] }
 0x7cd   :  { %v730_v46 = vpop.permute.xlu1 %729 }
 0x7ce   :  { %v737_v48 = vsel %vm452_vm9, %v736_v47, %v730_v46  ;;  %v1994_v46 = vld [vmem:[%s2952_s26 + $0x28] sm:$0xff] }
 0x7d5   :  { %v734_v49 = vpop.permute.xlu1 %733 }
 0x7d6   :  { %v738_v51 = vsel %vm454_vm10, %v737_v48, %v734_v49 }
 0x7d7   :  { %1988 = vmatmul.msk.f32.gmra.mxu3 %vm70_vm0, %v738_v51 }
 0x833   :  { %v865_v0 = vpop.f32.mrf.mxu0 }
 0x834   :  { %v866_v1 = vadd.f32 %v2588_v60, %v865_v0 }
 0x836   :  { %v873_v2 = vmul.f32 0.044715, %v866_v1  ;;  %v871_v33 = vmul.f32 0.5, %v866_v1 }
 0x838   :  { %v875_v3 = vmul.f32 %v873_v2, %v866_v1 }
 0x83a   :  { %v877_v4 = vmul.f32 %v875_v3, %v866_v1 }
 0x83c   :  { %v879_v5 = vadd.f32 %v877_v4, %v866_v1 }
 0x83e   :  { %v881_v7 = vmul.f32 0.7978846, %v879_v5 }
 0x840   :  { %2131 = vtanh.f32 %v881_v7 }
 0x846   :  { %v2132_v8 = vpop.eup %2131 }
 0x847   :  { %v885_v9 = vadd.f32 1.0, %v2132_v8 }
 0x849   :  { %v887_v11 = vmul.f32 %v885_v9, %v871_v33 }
 0x84b   :  { %1991 = vmatmul.msk.f32.vlgmr.msrb.gmra.mxu2 %vm901_vm14, %v887_v11 }
 0x85a   :  { %v773_v12 = vpop.f32.mrf.mxu3 }
 0x85b   :  { %v774_v13 = vadd.f32 %v2518_v61, %v773_v12 }
 0x85d   :  { %v777_v14 = vadd.f32 %v774_v13, %v2376_v52 }
 0x85f   :  { %v783_v50 = vsel %vm70_vm0, %v777_v14, 0.0 }
 0x860   :  { %784 = vadd.xlane.f32.xlu1 %v783_v50 }
 0x8ce   :  { %v925_v16 = vpop.f32.mrf.mxu2 }
 0x8cf   :  { %v926_v62 = vadd.f32 %v2598_v15, %v925_v16 }
 0x8d1   :  { %v931_v17 = vadd.f32 %v926_v62, %v832_v44  ;;  %v1996_v44 = vld [vmem:[%s2952_s26 + $0x38] sm:$0xff] }
 0x8d2   :  { %1017 = vmatpush.msra.mxu1 %v1996_v44 }
 0x8d3   :  { %v785_v18 = vpop.xlane.xlu1 %784  ;;  %v935_v19 = vsel %vm70_vm0, %v931_v17, 0.0 }
 0x8d4   :  { %v787_v20 = vmul.f32 %v785_v18, %v2346_v10  ;;  %936 = vadd.xlane.f32.xlu2 %v935_v19  ;;  %1018 = vmatpush.msra.mxu1 %v1995_v45 }
 0x8d6   :  { %v789_v61 = vsub.f32 %v777_v14, %v787_v20  ;;  %1019 = vmatpush.msra.mxu1 %v1994_v46  ;;  %v2081_v14 = vld [vmem:[%s2908_s5 + $0x1] ss:$0 sm:$0xff]  ;;  %s2960_s5 = smov 120  }
 0x8d8   :  { %v791_v52 = vmul.f32 %v789_v61, %v789_v61 }
 0x8da   :  { %v795_v21 = vsel %vm70_vm0, %v791_v52, 0.0 }
 0x8db   :  { %796 = vadd.xlane.f32.xlu0 %v795_v21 }
 0x947   :  { %v937_v22 = vpop.xlane.xlu2 %936 }
 0x948   :  { %v941_v23 = vmul.f32 %v937_v22, %v2346_v10 }
 0x94a   :  { %v943_v24 = vsub.f32 %v931_v17, %v941_v23 }
 0x94c   :  { %v945_v25 = vmul.f32 %v943_v24, %v943_v24 }
 0x94e   :  { %v797_v26 = vpop.xlane.xlu0 %796  ;;  %v947_v27 = vsel %vm70_vm0, %v945_v25, 0.0 }
 0x94f   :  { %v799_v28 = vmul.f32 %v797_v26, %v2346_v10  ;;  %948 = vadd.xlane.f32.xlu0 %v947_v27 }
 0x951   :  { %v801_v29 = vadd.f32 1e-12, %v799_v28 }
 0x953   :  { %2133 = vrsqrt.f32 %v801_v29  ;;  %vm818_vm1 = vweird.f32 %v801_v29 }
 0x959   :  { %v2134_v30 = vpop.eup %2133 }
 0x95a   :  { %v813_v31 = vmul.f32 %v2134_v30, %v801_v29  ;;  %vm819_vm15 = vweird.f32 %v2134_v30 }
 0x95b   :  { %vm820_vm2 = vmor %vm818_vm1, %vm819_vm15 }
 0x95c   :  { %v814_v32 = vmul.f32 %v2134_v30, %v813_v31 }
 0x95e   :  { %v815_v34 = vmul.f32 0.5, %v814_v32 }
 0x960   :  { %v816_v35 = vsub.f32 1.5, %v815_v34 }
 0x962   :  { %v817_v36 = vmul.f32 %v2134_v30, %v816_v35 }
 0x964   :  { %v821_v37 = vsel %vm820_vm2, %v2134_v30, %v817_v36 }
 0x965   :  { %v823_v40 = vmul.f32 %v821_v37, %v789_v61 }
 0x967   :  { %v828_v41 = vmul.f32 %v2547_v38, %v823_v40  ;;  %v1993_v38 = vld [vmem:[%s2952_s26 + $0x20] sm:$0xff] }
 0x968   :  { %1020 = vmatpush.msra.mxu1 %v1993_v38 }
 0x969   :  { %v833_v43 = vadd.f32 %v2552_v42, %v828_v41 }
 0x96b   :  { %1990 = vmatmul.msk.f32.gmra.mxu0 %vm70_vm0, %v833_v43 }
 0x9c2   :  { %v949_v42 = vpop.xlane.xlu0 %948 }
 0x9c3   :  { %v953_v47 = vmul.f32 %v949_v42, %v2346_v10 }
 0x9c5   :  { %v955_v48 = vadd.f32 1e-12, %v953_v47 }
 0x9c7   :  { %2135 = vrsqrt.f32 %v955_v48  ;;  %vm963_vm4 = vweird.f32 %v955_v48 }
 0x9cd   :  { %v2136_v49 = vpop.eup %2135 }
 0x9ce   :  { %v958_v51 = vmul.f32 %v2136_v49, %v955_v48  ;;  %vm964_vm3 = vweird.f32 %v2136_v49 }
 0x9cf   :  { %vm965_vm5 = vmor %vm963_vm4, %vm964_vm3 }
 0x9d0   :  { %v959_v53 = vmul.f32 %v2136_v49, %v958_v51 }
 0x9d2   :  { %v960_v54 = vmul.f32 0.5, %v959_v53 }
 0x9d4   :  { %v961_v55 = vsub.f32 1.5, %v960_v54 }
 0x9d6   :  { %v962_v39 = vmul.f32 %v2136_v49, %v961_v55 }
 0x9d8   :  { %v966_v57 = vsel %vm965_vm5, %v2136_v49, %v962_v39 }
 0x9d9   :  { %v977_v58 = vmul.f32 %v966_v57, %v943_v24 }
 0x9db   :  { %v982_v0 = vmul.f32 %v2626_v56, %v977_v58 }
 0x9dd   :  { %v2635_v1 = vadd.f32 %v2631_v59, %v982_v0 }
 0x9df   :  { %1998 = vmatmul.msk.f32.vlgmr.msra.gmra.mxu1 %vm70_vm0, %v2635_v1 }
 0x9e8   :  { %v868_v2 = vpop.f32.mrf.mxu0 }
 0x9e9   :  { %v869_v3 = vadd.f32 %v2588_v60, %v868_v2 }
 0x9eb   :  { %v874_v4 = vmul.f32 0.044715, %v869_v3  ;;  %v872_v11 = vmul.f32 0.5, %v869_v3 }
 0x9ed   :  { %v876_v5 = vmul.f32 %v874_v4, %v869_v3 }
 0x9ef   :  { %v878_v7 = vmul.f32 %v876_v5, %v869_v3 }
 0x9f1   :  { %v880_v8 = vadd.f32 %v878_v7, %v869_v3 }
 0x9f3   :  { %v882_v33 = vmul.f32 0.7978846, %v880_v8 }
 0x9f5   :  { %2137 = vtanh.f32 %v882_v33 }
 0x9fb   :  { %v2138_v9 = vpop.eup %2137 }
 0x9fc   :  { %v886_v12 = vadd.f32 1.0, %v2138_v9 }
 0x9fe   :  { %v888_v13 = vmul.f32 %v886_v12, %v872_v11 }
 0xa00   :  { %1992 = vmatmul.msk.f32.gmra.mxu2 %vm901_vm14, %v888_v13 }
 0xa5c   :  { %v1022_v50 = vpop.f32.mrf.mxu1 }
 0xa5d   :  { %v2644_v16 = vadd.f32 %v2081_v14, %v1022_v50 }
 0xa5f   :  { %1029 = vrot.lane.b32.xlu2 %v2644_v16, %s2219_s28 }
 0xa67   :  { %1096 = vrot.lane.b32.xlu2 %v2644_v16, %s2956_s0 }
 0xa6f   :  { %1163 = vrot.lane.b32.xlu2 %v2644_v16, %s2957_s21 }
 0xa77   :  { %1230 = vrot.lane.b32.xlu2 %v2644_v16, %s2958_s24 }
 0xa7f   :  { %1161 = vrot.lane.b32.xlu2 %v2644_v16, %s2959_s3 }
 0xa83   :  { %v928_v60 = vpop.f32.mrf.mxu2 }
 0xa84   :  { %v929_v62 = vadd.f32 %v2598_v15, %v928_v60 }
 0xa86   :  { %v932_v17 = vadd.f32 %v929_v62, %v833_v43 }
 0xa88   :  { %v938_v18 = vsel %vm70_vm0, %v932_v17, 0.0 }
 0xa89   :  { %939 = vadd.xlane.f32.xlu0 %v938_v18 }
 0xab9   :  { %v1030_v19 = vpop.permute.xlu2 %1029 }
 0xaba   :  { %2000 = vmatpush.xpose.msk.msrb.mxu3 %vm173_vm8, %v1030_v19 }
 0xabd   :  { %2001 = vmatmul.msk.f32.vlgmr.msrb.gmra.mxu3 %vm173_vm8, %v2644_v16 }
 0xac1   :  { %v1097_v20 = vpop.permute.xlu2 %1096 }
 0xac2   :  { %2003 = vmatpush.xpose.msk.msrb.mxu1 %vm173_vm8, %v1097_v20 }
 0xac9   :  { %v1164_v61 = vpop.permute.xlu2 %1163 }
 0xad1   :  { %v1231_v52 = vpop.permute.xlu2 %1230 }
 0xad2   :  { %2009 = vmatpush.xpose.msk.msra.mxu1 %vm173_vm8, %v1231_v52 }
 0xad9   :  { %v1162_v4 = vpop.permute.xlu2 %1161 }
 0xafc   :  { %v940_v21 = vpop.xlane.xlu0 %939 }
 0xafd   :  { %v942_v15 = vmul.f32 %v940_v21, %v2346_v10 }
 0xaff   :  { %v944_v22 = vsub.f32 %v932_v17, %v942_v15 }
 0xb01   :  { %v946_v23 = vmul.f32 %v944_v22, %v944_v22 }
 0xb03   :  { %v950_v24 = vsel %vm70_vm0, %v946_v23, 0.0 }
 0xb04   :  { %951 = vadd.xlane.f32.xlu0 %v950_v24 }
 0xb18   :  { %1094 = vrot.lane.b32.xlu0 %v2644_v16, %s2960_s5 }
 0xb20   :  { %1228 = vrot.lane.b32.xlu0 %v2644_v16, %s2961_s22 }
 0xb40   :  { %v1052_v25 = vpop.f32.mrf.mxu3 }
 0xb41   :  { %v1055_v26 = vmul.f32 0.35355338, %v1052_v25 }
 0xb43   :  { %v1056_v27 = vadd.f32 %v1055_v26, %v2414_v63 }
 0xb45   :  { %v1057_v28 = vsel %vm173_vm8, %v1056_v27, -inf }
 0xb46   :  { %1058 = vmax.xlane.f32.xlu1 %v1057_v28 }
 0xb5f   :  { %1068 = vrot.lane.b32.xlu1 %v2644_v16, %s2220_s4 }
 0xb77   :  { %v952_v29 = vpop.xlane.xlu0 %951 }
 0xb78   :  { %v954_v30 = vmul.f32 %v952_v29, %v2346_v10 }
 0xb7a   :  { %v956_v31 = vadd.f32 1e-12, %v954_v30 }
 0xb7c   :  { %2139 = vrsqrt.f32 %v956_v31  ;;  %vm973_vm7 = vweird.f32 %v956_v31 }
 0xb82   :  { %v2140_v32 = vpop.eup %2139 }
 0xb83   :  { %v968_v34 = vmul.f32 %v2140_v32, %v956_v31  ;;  %vm974_vm6 = vweird.f32 %v2140_v32 }
 0xb84   :  { %vm975_vm11 = vmor %vm973_vm7, %vm974_vm6  ;;  %vm1854_vm6 = vcmask 1040384   ;;  %vm1919_vm7 = vcmask 17408  }
 0xb85   :  { %v969_v35 = vmul.f32 %v2140_v32, %v968_v34 }
 0xb87   :  { %v970_v36 = vmul.f32 0.5, %v969_v35 }
 0xb89   :  { %v971_v37 = vsub.f32 1.5, %v970_v36 }
 0xb8a   :  { %v1095_v46 = vpop.permute.xlu0 %1094 }
 0xb8b   :  { %v972_v40 = vmul.f32 %v2140_v32, %v971_v37 }
 0xb8d   :  { %v976_v41 = vsel %vm975_vm11, %v2140_v32, %v972_v40 }
 0xb8e   :  { %v978_v43 = vmul.f32 %v976_v41, %v944_v22 }
 0xb90   :  { %v983_v44 = vmul.f32 %v2626_v56, %v978_v43 }
 0xb92   :  { %v2676_v45 = vadd.f32 %v2631_v59, %v983_v44  ;;  %v1229_v38 = vpop.permute.xlu0 %1228 }
 0xb94   :  { %1999 = vmatmul.msk.f32.gmra.mxu1 %vm70_vm0, %v2676_v45 }
 0xb9c   :  { %2004 = vmatmul.msk.f32.vlgmr.msrb.gmra.mxu1 %vm173_vm8, %v1095_v46 }
 0xba4   :  { %2010 = vmatmul.msk.f32.vlgmr.msra.gmra.mxu1 %vm173_vm8, %v1229_v38 }
 0xbb9   :  { %v1059_v42 = vpop.xlane.xlu1 %1058 }
 0xbba   :  { %v1060_v51 = vsub.f32 %v1056_v27, %v1059_v42 }
 0xbbc   :  { %v1061_v53 = vmul.f32 1.442695, %v1060_v51 }
 0xbbe   :  { %2141 = vpow2.f32 %v1061_v53 }
 0xbc4   :  { %v2142_v55 = vpop.eup %2141 }
 0xbc5   :  { %v1063_v56 = vsel %vm173_vm8, %v2142_v55, 0.0 }
 0xbd1   :  { %v1069_v47 = vpop.permute.xlu1 %1068 }
 0xbd2   :  { %1089 = vmatpush.msrb.mxu0 %v1069_v47 }
 0xbd4   :  { %2006 = vmatpush.xpose.msk.msra.mxu0 %vm173_vm8, %v1164_v61 }
 0xc11   :  { %v1025_v48 = vpop.f32.mrf.mxu1 }
 0xc12   :  { %v2683_v49 = vadd.f32 %v2081_v14, %v1025_v48 }
 0xc14   :  { %1376 = vrot.lane.b32.xlu0 %v2683_v49, %s2960_s5  ;;  %1378 = vrot.lane.b32.xlu2 %v2683_v49, %s2956_s0 }
 0xc15   :  { %1311 = vrot.lane.b32.xlu1 %v2683_v49, %s2219_s28  ;;  %s2962_s28 = smov 48  }
 0xc19   :  { %v1119_v54 = vpop.f32.mrf.mxu1 }
 0xc1a   :  { %v1122_v39 = vmul.f32 0.35355338, %v1119_v54 }
 0xc1c   :  { %1512 = vrot.lane.b32.xlu2 %v2683_v49, %s2958_s24  ;;  %v1123_v57 = vadd.f32 %v1122_v39, %v2414_v63 }
 0xc1d   :  { %1445 = vrot.lane.b32.xlu1 %v2683_v49, %s2957_s21 }
 0xc1e   :  { %v1124_v59 = vsel %vm173_vm8, %v1123_v57, -inf }
 0xc21   :  { %v1253_v58 = vpop.f32.mrf.mxu1 }
 0xc22   :  { %v1256_v0 = vmul.f32 0.35355338, %v1253_v58 }
 0xc24   :  { %v1257_v2 = vadd.f32 %v1256_v0, %v2414_v63 }
 0xc25   :  { %1510 = vrot.lane.b32.xlu1 %v2683_v49, %s2961_s22 }
 0xc26   :  { %v1258_v3 = vsel %vm173_vm8, %v1257_v2, -inf }
 0xc3e   :  { %1064 = vadd.xlane.f32.xlu0 %v1063_v56 }
 0xc45   :  { %1125 = vmax.xlane.f32.xlu2 %v1124_v59 }
 0xc4f   :  { %1259 = vmax.xlane.f32.xlu1 %v1258_v3 }
 0xc52   :  { %1443 = vrot.lane.b32.xlu0 %v2683_v49, %s2959_s3 }
 0xc6e   :  { %v1379_v5 = vpop.permute.xlu2 %1378 }
 0xc6f   :  { %2015 = vmatpush.xpose.msk.msrb.mxu1 %vm173_vm8, %v1379_v5 }
 0xc76   :  { %v1513_v7 = vpop.permute.xlu2 %1512 }
 0xc77   :  { %2021 = vmatpush.xpose.msk.msra.mxu1 %vm173_vm8, %v1513_v7 }
 0xc86   :  { %v1377_v8 = vpop.permute.xlu0 %1376 }
 0xc87   :  { %v1312_v33 = vpop.permute.xlu1 %1311  ;;  %2016 = vmatmul.msk.f32.vlgmr.msrb.gmra.mxu1 %vm173_vm8, %v1377_v8 }
 0xc8f   :  { %v1446_v9 = vpop.permute.xlu1 %1445 }
 0xc97   :  { %v1511_v11 = vpop.permute.xlu1 %1510 }
 0xc98   :  { %2022 = vmatmul.msk.f32.vlgmr.msra.gmra.mxu1 %vm173_vm8, %v1511_v11 }
 0xcb1   :  { %v1065_v12 = vpop.xlane.xlu0 %1064 }
 0xcb2   :  { %2143 = vrcp.f32 %v1065_v12 }
 0xcb8   :  { %v2144_v13 = vpop.eup %2143  ;;  %v1126_v17 = vpop.xlane.xlu2 %1125 }
 0xcb9   :  { %v1067_v14 = vmul.f32 %v2144_v13, %v2142_v55  ;;  %v1127_v61 = vsub.f32 %v1123_v57, %v1126_v17 }
 0xcbb   :  { %2002 = vmatmul.msk.f32.vlgmr.msrb.gmra.mxu0 %vm173_vm8, %v1067_v14  ;;  %v1128_v15 = vmul.f32 1.442695, %v1127_v61 }
 0xcbc   :  { %2012 = vmatpush.xpose.msk.msrb.mxu0 %vm173_vm8, %v1312_v33 }
 0xcbd   :  { %2145 = vpow2.f32 %v1128_v15 }
 0xcc2   :  { %v1260_v23 = vpop.xlane.xlu1 %1259 }
 0xcc3   :  { %2007 = vmatmul.msk.f32.vlgmr.msra.gmra.mxu0 %vm173_vm8, %v1162_v4  ;;  %v1261_v28 = vsub.f32 %v1257_v2, %v1260_v23  ;;  %v2146_v34 = vpop.eup %2145 }
 0xcc4   :  { %2018 = vmatpush.xpose.msk.msra.mxu0 %vm173_vm8, %v1446_v9  ;;  %v1444_v50 = vpop.permute.xlu0 %1443  ;;  %v1130_v36 = vsel %vm173_vm8, %v2146_v34, 0.0 }
 0xcc5   :  { %v1262_v31 = vmul.f32 1.442695, %v1261_v28 }
 0xcc7   :  { %2147 = vpow2.f32 %v1262_v31 }
 0xccb   :  { %2013 = vmatmul.msk.f32.vlgmr.msrb.gmra.mxu0 %vm173_vm8, %v2683_v49 }
 0xccd   :  { %v2148_v37 = vpop.eup %2147 }
 0xcce   :  { %v1264_v40 = vsel %vm173_vm8, %v2148_v37, 0.0 }
 0xcd3   :  { %2019 = vmatmul.msk.f32.vlgmr.msra.gmra.mxu0 %vm173_vm8, %v1444_v50 }
 0xd04   :  { %v1401_v19 = vpop.f32.mrf.mxu1 }
 0xd05   :  { %v1404_v52 = vmul.f32 0.35355338, %v1401_v19 }
 0xd07   :  { %v1405_v25 = vadd.f32 %v1404_v52, %v2474_v6 }
 0xd15   :  { %v1535_v26 = vpop.f32.mrf.mxu1 }
 0xd16   :  { %v1538_v29 = vmul.f32 0.35355338, %v1535_v26 }
 0xd18   :  { %v1539_v32 = vadd.f32 %v1538_v29, %v2474_v6 }
 0xd1a   :  { %v1540_v35 = vsel %vm173_vm8, %v1539_v32, -inf }
 0xd38   :  { %v2715_v60 = vpop.f32.mrf.mxu0 }
 0xd40   :  { %v1186_v62 = vpop.f32.mrf.mxu0 }
 0xd41   :  { %v1189_v18 = vmul.f32 0.35355338, %v1186_v62 }
 0xd43   :  { %v1190_v20 = vadd.f32 %v1189_v18, %v2414_v63  ;;  %v1406_v63 = vsel %vm173_vm8, %v1405_v25, -inf }
 0xd45   :  { %v1191_v21 = vsel %vm173_vm8, %v1190_v20, -inf }
 0xd46   :  { %1192 = vmax.xlane.f32.xlu0 %v1191_v21 }
 0xd48   :  { %v1334_v22 = vpop.f32.mrf.mxu0 }
 0xd49   :  { %v1337_v24 = vmul.f32 0.35355338, %v1334_v22 }
 0xd4b   :  { %v1338_v27 = vadd.f32 %v1337_v24, %v2474_v6 }
 0xd4d   :  { %v1339_v30 = vsel %vm173_vm8, %v1338_v27, -inf }
 0xd4e   :  { %1340 = vmax.xlane.f32.xlu2 %v1339_v30  ;;  %1407 = vmax.xlane.f32.xlu0 %v1406_v63 }
 0xd50   :  { %v1468_v55 = vpop.f32.mrf.mxu0 }
 0xd51   :  { %v1471_v58 = vmul.f32 0.35355338, %v1468_v55 }
 0xd53   :  { %v1472_v3 = vadd.f32 %v1471_v58, %v2474_v6 }
 0xd55   :  { %v1473_v8 = vsel %vm173_vm8, %v1472_v3, -inf }
 0xd56   :  { %1541 = vmax.xlane.f32.xlu2 %v1540_v35  ;;  %1131 = vadd.xlane.f32.xlu0 %v1130_v36  ;;  %v2025_v36 = vld [vmem:[%s2909_s6 + $0x28] sm:$0xff] }
 0xd5e   :  { %1265 = vadd.xlane.f32.xlu2 %v1264_v40 }
 0xd6a   :  { %1135 = vrot.lane.b32.xlu0 %v2644_v16, %s2226_s2 }
 0xd72   :  { %1269 = vrot.lane.b32.xlu0 %v2644_v16, %s2227_s25 }
 0xd76   :  { %1202 = vrot.lane.b32.xlu2 %v2644_v16, %s2962_s28 }
 0xd7a   :  { %1350 = vrot.lane.b32.xlu0 %v2683_v49, %s2220_s4  ;;  %s2963_s4 = smov 8  }
 0xd7e   :  { %1417 = vrot.lane.b32.xlu2 %v2683_v49, %s2226_s2  ;;  %s2964_s2 = smov 24  }
 0xd82   :  { %1484 = vrot.lane.b32.xlu0 %v2683_v49, %s2962_s28 }
 0xdb9   :  { %v1193_v41 = vpop.xlane.xlu0 %1192 }
 0xdba   :  { %v1194_v56 = vsub.f32 %v1190_v20, %v1193_v41 }
 0xdbc   :  { %v1195_v0 = vmul.f32 1.442695, %v1194_v56  ;;  %v2082_v56 = vld [vmem:[%s2910_s7 + $0x1] ss:$0 sm:$0xff] }
 0xdc1   :  { %v1341_v43 = vpop.xlane.xlu2 %1340  ;;  %v1408_v44 = vpop.xlane.xlu0 %1407 }
 0xdc2   :  { %v1409_v46 = vsub.f32 %v1405_v25, %v1408_v44  ;;  %v1342_v7 = vsub.f32 %v1338_v27, %v1341_v43 }
 0xdc4   :  { %v1410_v38 = vmul.f32 1.442695, %v1409_v46  ;;  %v1343_v9 = vmul.f32 1.442695, %v1342_v7 }
 0xdc6   :  { %2149 = vpow2.f32 %v1410_v38  ;;  %v2024_v38 = vld [vmem:[%s2909_s6 + $0x20] sm:$0xff] }
 0xdc9   :  { %v1542_v42 = vpop.xlane.xlu2 %1541  ;;  %v1132_v53 = vpop.xlane.xlu0 %1131 }
 0xdca   :  { %v1543_v47 = vsub.f32 %v1539_v32, %v1542_v42  ;;  %v2027_v32 = vld [vmem:[%s2909_s6 + $0x38] sm:$0xff] }
 0xdcb   :  { %1620 = vmatpush.msrb.mxu0 %v2027_v32 }
 0xdcc   :  { %v1544_v48 = vmul.f32 1.442695, %v1543_v47  ;;  %v2150_v51 = vpop.eup %2149 }
 0xdcd   :  { %v1412_v16 = vsel %vm173_vm8, %v2150_v51, 0.0 }
 0xdce   :  { %2151 = vpow2.f32 %v1544_v48  ;;  %1413 = vadd.xlane.f32.xlu1 %v1412_v16 }
 0xdcf   :  { %2153 = vrcp.f32 %v1132_v53 }
 0xdd1   :  { %v1266_v54 = vpop.xlane.xlu2 %1265 }
 0xdd2   :  { %2155 = vrcp.f32 %v1266_v54 }
 0xdd3   :  { %2157 = vpow2.f32 %v1195_v0 }
 0xdd4   :  { %v2740_v39 = vpop.eup %2151  ;;  %2159 = vpow2.f32 %v1343_v9 }
 0xdd5   :  { %v1546_v57 = vsel %vm173_vm8, %v2740_v39, 0.0  ;;  %v2154_v59 = vpop.eup %2153 }
 0xdd6   :  { %1547 = vadd.xlane.f32.xlu1 %v1546_v57  ;;  %v1134_v4 = vmul.f32 %v2154_v59, %v2146_v34  ;;  %v2026_v34 = vld [vmem:[%s2909_s6 + $0x30] sm:$0xff] }
 0xdd7   :  { %1621 = vmatpush.msrb.mxu0 %v2026_v34 }
 0xdd8   :  { %v2156_v33 = vpop.eup %2155 }
 0xdd9   :  { %v1203_v2 = vpop.permute.xlu2 %1202  ;;  %v2158_v11 = vpop.eup %2157  ;;  %v1268_v12 = vmul.f32 %v2156_v33, %v2148_v37  ;;  %1622 = vmatpush.msrb.mxu0 %v2025_v36 }
 0xdda   :  { %1223 = vmatpush.msra.mxu2 %v1203_v2  ;;  %v1197_v6 = vsel %vm173_vm8, %v2158_v11, 0.0  ;;  %v2160_v50 = vpop.eup %2159 }
 0xddb   :  { %v1345_v17 = vsel %vm173_vm8, %v2160_v50, 0.0  ;;  %1623 = vmatpush.msrb.mxu0 %v2024_v38 }
 0xddc   :  { %v1136_v5 = vpop.permute.xlu0 %1135 }
 0xddd   :  { %1156 = vmatpush.msra.mxu3 %v1136_v5 }
 0xdde   :  { %2005 = vmatmul.msk.f32.vlgmr.msra.gmra.mxu3 %vm173_vm8, %v1134_v4  ;;  %1474 = vmax.xlane.f32.xlu1 %v1473_v8 }
 0xde1   :  { %v1418_v14 = vpop.permute.xlu2 %1417 }
 0xde4   :  { %v1270_v13 = vpop.permute.xlu0 %1269 }
 0xde5   :  { %1290 = vmatpush.msrb.mxu3 %v1270_v13 }
 0xde6   :  { %2011 = vmatmul.msk.f32.vlgmr.msrb.gmra.mxu3 %vm173_vm8, %v1268_v12  ;;  %1198 = vadd.xlane.f32.xlu1 %v1197_v6 }
 0xde7   :  { %1438 = vmatpush.msra.mxu3 %v1418_v14 }
 0xdec   :  { %v1351_v62 = vpop.permute.xlu0 %1350 }
 0xded   :  { %1371 = vmatpush.msrb.mxu2 %v1351_v62  ;;  %v2035_v62 = vld [vmem:[%s2913_s10 + $0x30] sm:$0xff] }
 0xdee   :  { %1346 = vadd.xlane.f32.xlu1 %v1345_v17  ;;  %v2034_v17 = vld [vmem:[%s2913_s10 + $0x28] sm:$0xff] }
 0xdf4   :  { %v1485_v29 = vpop.permute.xlu0 %1484 }
 0xe41   :  { %v1414_v18 = vpop.xlane.xlu1 %1413 }
 0xe42   :  { %2161 = vrcp.f32 %v1414_v18 }
 0xe48   :  { %v2162_v19 = vpop.eup %2161 }
 0xe49   :  { %v1416_v20 = vmul.f32 %v2162_v19, %v2150_v51  ;;  %v1548_v61 = vpop.xlane.xlu1 %1547 }
 0xe4b   :  { %2017 = vmatmul.msk.f32.vlgmr.msra.gmra.mxu3 %vm173_vm8, %v1416_v20 }
 0xe51   :  { %v1475_v52 = vpop.xlane.xlu1 %1474 }
 0xe52   :  { %v1476_v21 = vsub.f32 %v1472_v3, %v1475_v52 }
 0xe54   :  { %v1477_v15 = vmul.f32 1.442695, %v1476_v21 }
 0xe56   :  { %2163 = vpow2.f32 %v1477_v15 }
 0xe59   :  { %v1199_v22 = vpop.xlane.xlu1 %1198 }
 0xe5a   :  { %2165 = vrcp.f32 %v1199_v22 }
 0xe5c   :  { %v2164_v23 = vpop.eup %2163 }
 0xe5d   :  { %v1479_v24 = vsel %vm173_vm8, %v2164_v23, 0.0 }
 0xe5e   :  { %1480 = vadd.xlane.f32.xlu1 %v1479_v24 }
 0xe60   :  { %v2166_v25 = vpop.eup %2165 }
 0xe61   :  { %v1158_v26 = vpop.f32.mrf.mxu3  ;;  %v1201_v27 = vmul.f32 %v2166_v25, %v2158_v11  ;;  %v1347_v28 = vpop.xlane.xlu1 %1346 }
 0xe62   :  { %1296 = vrot.lane.b32.xlu2 %v1158_v26, %s2963_s4  ;;  %2167 = vrcp.f32 %v1347_v28 }
 0xe63   :  { %2008 = vmatmul.msk.f32.vlgmr.msra.gmra.mxu2 %vm173_vm8, %v1201_v27 }
 0xe64   :  { %1505 = vmatpush.msra.mxu2 %v1485_v29  ;;  %v2083_v29 = vld [vmem:[%s2911_s8 + $0x1] ss:$0 sm:$0xff] }
 0xe68   :  { %v2168_v30 = vpop.eup %2167 }
 0xe69   :  { %v1292_v63 = vpop.f32.mrf.mxu3  ;;  %v1349_v31 = vmul.f32 %v2168_v30, %v2160_v50  ;;  %v2036_v50 = vld [vmem:[%s2913_s10 + $0x38] sm:$0xff] }
 0xe6a   :  { %1304 = vrot.lane.b32.xlu2 %v1292_v63, %s2964_s2 }
 0xe6b   :  { %2014 = vmatmul.msk.f32.vlgmr.msrb.gmra.mxu2 %vm173_vm8, %v1349_v31  ;;  %v2084_v31 = vld [vmem:[%s2912_s9 + $0x1] ss:$0 sm:$0xff] }
 0xe6c   :  { %1719 = vmatpush.msrb.mxu2 %v2036_v50  ;;  %v2086_v50 = vld [vmem:[%s2916_s13 + $0x1] ss:$0 sm:$0xff] }
 0xe6e   :  { %1720 = vmatpush.msrb.mxu2 %v2035_v62 }
 0xe70   :  { %1721 = vmatpush.msrb.mxu2 %v2034_v17 }
 0xe77   :  { %1551 = vrot.lane.b32.xlu1 %v2683_v49, %s2227_s25  ;;  %s2965_s25 = smov 16  }
 0xebc   :  { %v1297_v42 = vpop.permute.xlu2 %1296 }
 0xebd   :  { %v1307_v48 = vsel %vm173_vm8, %v2715_v60, %v1297_v42 }
 0xec4   :  { %v1305_v16 = vpop.permute.xlu2 %1304 }
 0xece   :  { %v1440_v46 = vpop.f32.mrf.mxu3 }
 0xed1   :  { %v1481_v35 = vpop.xlane.xlu1 %1480 }
 0xed2   :  { %2169 = vrcp.f32 %v1481_v35 }
 0xed3   :  { %2171 = vrcp.f32 %v1548_v61 }
 0xed8   :  { %v2170_v37 = vpop.eup %2169 }
 0xed9   :  { %v1483_v40 = vmul.f32 %v2170_v37, %v2164_v23  ;;  %v2172_v49 = vpop.eup %2171  ;;  %v2047_v37 = vld [vmem:[%s2915_s12 + $0x78] sm:$0xff] }
 0xeda   :  { %v1550_v43 = vmul.f32 %v2172_v49, %v2740_v39  ;;  %1776 = vmatpush.msrb.mxu1 %v2047_v37  ;;  %v2046_v49 = vld [vmem:[%s2915_s12 + $0x70] sm:$0xff] }
 0xedb   :  { %2020 = vmatmul.msk.f32.vlgmr.msra.gmra.mxu2 %vm173_vm8, %v1483_v40 }
 0xedc   :  { %1777 = vmatpush.msrb.mxu1 %v2046_v49  ;;  %v1858_v49 = vld [vmem:[%s2919_s16 + $0x10] sm:$0xff] }
 0xee6   :  { %v1225_v41 = vpop.f32.mrf.mxu2 }
 0xee7   :  { %1300 = vrot.lane.b32.xlu0 %v1225_v41, %s2965_s25  ;;  %v2045_v41 = vld [vmem:[%s2915_s12 + $0x68] sm:$0xff] }
 0xee8   :  { %1778 = vmatpush.msrb.mxu1 %v2045_v41 }
 0xee9   :  { %v1552_v44 = vpop.permute.xlu1 %1551 }
 0xeea   :  { %1572 = vmatpush.msrb.mxu3 %v1552_v44  ;;  %v2043_v44 = vld [vmem:[%s2915_s12 + $0x58] sm:$0xff] }
 0xeeb   :  { %2023 = vmatmul.msk.f32.vlgmr.msrb.gmra.mxu3 %vm173_vm8, %v1550_v43  ;;  %v2044_v43 = vld [vmem:[%s2915_s12 + $0x60] sm:$0xff] }
 0xeec   :  { %1779 = vmatpush.msrb.mxu1 %v2044_v43  ;;  %v1857_v43 = vld [vmem:[%s2919_s16 + $0x8] sm:$0xff] }
 0xeee   :  { %v1373_v47 = vpop.f32.mrf.mxu2  ;;  %1780 = vmatpush.msrb.mxu1 %v2043_v44  ;;  %v1856_v44 = vld [vmem:[%s2919_s16] sm:$0xff] }
 0xeef   :  { %1578 = vrot.lane.b32.xlu0 %v1440_v46, %s2963_s4  ;;  %v2042_v46 = vld [vmem:[%s2915_s12 + $0x50] sm:$0xff] }
 0xef0   :  { %1781 = vmatpush.msrb.mxu1 %v2042_v46 }
 0xf59   :  { %v1301_v51 = vpop.permute.xlu0 %1300 }
 0xf5a   :  { %v1308_v53 = vsel %vm452_vm9, %v1307_v48, %v1301_v51  ;;  %v2040_v51 = vld [vmem:[%s2915_s12 + $0x40] sm:$0xff] }
 0xf5b   :  { %v1309_v54 = vsel %vm454_vm10, %v1308_v53, %v1305_v16 }
 0xf5c   :  { %2029 = vmatmul.msk.f32.vlgmr.msrb.gmra.mxu0 %vm70_vm0, %v1309_v54 }
 0xf5e   :  { %v1507_v55 = vpop.f32.mrf.mxu2 }
 0xf5f   :  { %1582 = vrot.lane.b32.xlu2 %v1507_v55, %s2965_s25 }
 0xf61   :  { %v1579_v57 = vpop.permute.xlu0 %1578 }
 0xf62   :  { %v1589_v3 = vsel %vm173_vm8, %v1373_v47, %v1579_v57  ;;  %v2041_v47 = vld [vmem:[%s2915_s12 + $0x48] sm:$0xff] }
 0xf63   :  { %1782 = vmatpush.msrb.mxu1 %v2041_v47 }
 0xf65   :  { %1783 = vmatpush.msrb.mxu1 %v2040_v51 }
 0xf6e   :  { %v1574_v39 = vpop.f32.mrf.mxu3 }
 0xf6f   :  { %1586 = vrot.lane.b32.xlu0 %v1574_v39, %s2964_s2  ;;  %v2085_v39 = vld [vmem:[%s2914_s11 + $0x1] ss:$0 sm:$0xff]  ;;  %s1952_s11 = sshll.u32 %s2923_s20, 4  ;;  %s1953_s11 = int_to_ptr.hbm [resolvable:$true] %s1952_s11 }
 0xfb9   :  { %v1583_v0 = vpop.permute.xlu2 %1582 }
 0xfba   :  { %v1590_v4 = vsel %vm452_vm9, %v1589_v3, %v1583_v0 }
 0xfd9   :  { %v1625_v60 = vpop.f32.mrf.mxu0 }
 0xfda   :  { %v1626_v58 = vadd.f32 %v2082_v56, %v1625_v60 }
 0xfdc   :  { %v1631_v59 = vadd.f32 %v1626_v58, %v2635_v1 }
 0xfde   :  { %v1637_v2 = vsel %vm70_vm0, %v1631_v59, 0.0 }
 0xfdf   :  { %1638 = vadd.xlane.f32.xlu1 %v1637_v2 }
 0xfe1   :  { %v1587_v5 = vpop.permute.xlu0 %1586 }
 0xfe2   :  { %v1591_v7 = vsel %vm454_vm10, %v1590_v4, %v1587_v5 }
 0xfe3   :  { %2030 = vmatmul.msk.f32.gmra.mxu0 %vm70_vm0, %v1591_v7 }
0x1052   :  { %v1639_v8 = vpop.xlane.xlu1 %1638 }
0x1053   :  { %v1643_v33 = vmul.f32 %v1639_v8, %v2346_v10 }
0x1055   :  { %v1645_v9 = vsub.f32 %v1631_v59, %v1643_v33 }
0x1057   :  { %v1647_v11 = vmul.f32 %v1645_v9, %v1645_v9 }
0x1059   :  { %v1649_v1 = vsel %vm70_vm0, %v1647_v11, 0.0 }
0x105a   :  { %1650 = vadd.xlane.f32.xlu0 %v1649_v1 }
0x1060   :  { %v1628_v12 = vpop.f32.mrf.mxu0 }
0x1061   :  { %v1629_v13 = vadd.f32 %v2082_v56, %v1628_v12 }
0x1063   :  { %v1632_v14 = vadd.f32 %v1629_v13, %v2676_v45  ;;  %v2033_v45 = vld [vmem:[%s2913_s10 + $0x20] sm:$0xff] }
0x1064   :  { %1722 = vmatpush.msrb.mxu2 %v2033_v45 }
0x1065   :  { %v1640_v6 = vsel %vm70_vm0, %v1632_v14, 0.0 }
0x1066   :  { %1641 = vadd.xlane.f32.xlu2 %v1640_v6 }
0x10cd   :  { %v1651_v18 = vpop.xlane.xlu0 %1650 }
0x10ce   :  { %v1655_v19 = vmul.f32 %v1651_v18, %v2346_v10 }
0x10d0   :  { %v1657_v20 = vadd.f32 1e-12, %v1655_v19 }
0x10d2   :  { %2173 = vrsqrt.f32 %v1657_v20  ;;  %vm1665_vm9 = vweird.f32 %v1657_v20 }
0x10d8   :  { %v2174_v61 = vpop.eup %2173 }
0x10d9   :  { %v1660_v52 = vmul.f32 %v2174_v61, %v1657_v20  ;;  %v1642_v21 = vpop.xlane.xlu2 %1641  ;;  %vm1666_vm8 = vweird.f32 %v2174_v61 }
0x10da   :  { %v1644_v15 = vmul.f32 %v1642_v21, %v2346_v10  ;;  %vm1667_vm10 = vmor %vm1665_vm9, %vm1666_vm8 }
0x10db   :  { %v1661_v22 = vmul.f32 %v2174_v61, %v1660_v52 }
0x10dc   :  { %v1646_v23 = vsub.f32 %v1632_v14, %v1644_v15 }
0x10dd   :  { %v1662_v24 = vmul.f32 0.5, %v1661_v22 }
0x10de   :  { %v1648_v25 = vmul.f32 %v1646_v23, %v1646_v23 }
0x10df   :  { %v1663_v26 = vsub.f32 1.5, %v1662_v24 }
0x10e0   :  { %v1652_v27 = vsel %vm70_vm0, %v1648_v25, 0.0 }
0x10e1   :  { %v1664_v28 = vmul.f32 %v2174_v61, %v1663_v26  ;;  %1653 = vadd.xlane.f32.xlu2 %v1652_v27 }
0x10e3   :  { %v1668_v30 = vsel %vm1667_vm10, %v2174_v61, %v1664_v28 }
0x10e4   :  { %v1679_v63 = vmul.f32 %v1668_v30, %v1645_v9 }
0x10e6   :  { %v1684_v32 = vmul.f32 %v2083_v29, %v1679_v63 }
0x10e8   :  { %v1689_v34 = vadd.f32 %v2084_v31, %v1684_v32 }
0x10ea   :  { %2038 = vmatmul.msk.f32.vlgmr.msrb.gmra.mxu2 %vm70_vm0, %v1689_v34 }
0x1154   :  { %v1654_v35 = vpop.xlane.xlu2 %1653 }
0x1155   :  { %v1656_v36 = vmul.f32 %v1654_v35, %v2346_v10 }
0x1157   :  { %v1658_v40 = vadd.f32 1e-12, %v1656_v36 }
0x1159   :  { %2175 = vrsqrt.f32 %v1658_v40  ;;  %vm1675_vm13 = vweird.f32 %v1658_v40 }
0x115f   :  { %v2176_v38 = vpop.eup %2175 }
0x1160   :  { %v1670_v42 = vmul.f32 %v2176_v38, %v1658_v40  ;;  %vm1676_vm12 = vweird.f32 %v2176_v38  ;;  %v1859_v40 = vld [vmem:[%s2919_s16 + $0x18] sm:$0xff] }
0x1161   :  { %vm1677_vm15 = vmor %vm1675_vm13, %vm1676_vm12  ;;  %1879 = vmatpush.msra.mxu3 %v1859_v40 }
0x1162   :  { %v1671_v48 = vmul.f32 %v2176_v38, %v1670_v42 }
0x1163   :  { %1880 = vmatpush.msra.mxu3 %v1858_v49 }
0x1164   :  { %v1672_v16 = vmul.f32 0.5, %v1671_v48 }
0x1165   :  { %1881 = vmatpush.msra.mxu3 %v1857_v43 }
0x1166   :  { %v1673_v53 = vsub.f32 1.5, %v1672_v16 }
0x1167   :  { %1882 = vmatpush.msra.mxu3 %v1856_v44 }
0x1168   :  { %v1674_v54 = vmul.f32 %v2176_v38, %v1673_v53 }
0x116a   :  { %v1678_v55 = vsel %vm1677_vm15, %v2176_v38, %v1674_v54 }
0x116b   :  { %v1680_v56 = vmul.f32 %v1678_v55, %v1646_v23 }
0x116d   :  { %v1724_v57 = vpop.f32.mrf.mxu2  ;;  %v1685_v60 = vmul.f32 %v2083_v29, %v1680_v56 }
0x116e   :  { %v1725_v58 = vadd.f32 %v2085_v39, %v1724_v57 }
0x116f   :  { %v1690_v59 = vadd.f32 %v2084_v31, %v1685_v60 }
0x1170   :  { %v1732_v0 = vmul.f32 0.044715, %v1725_v58  ;;  %v1730_v8 = vmul.f32 0.5, %v1725_v58 }
0x1171   :  { %2039 = vmatmul.msk.f32.gmra.mxu2 %vm70_vm0, %v1690_v59 }
0x1172   :  { %v1734_v2 = vmul.f32 %v1732_v0, %v1725_v58 }
0x1174   :  { %v1736_v3 = vmul.f32 %v1734_v2, %v1725_v58 }
0x1176   :  { %v1738_v4 = vadd.f32 %v1736_v3, %v1725_v58 }
0x1178   :  { %v1740_v5 = vmul.f32 0.7978846, %v1738_v4 }
0x117a   :  { %2177 = vtanh.f32 %v1740_v5  ;;  %v2088_v5 = vld [vmem:[%s2918_s15 + $0x1] ss:$0 sm:$0xff] }
0x1180   :  { %v2178_v7 = vpop.eup %2177 }
0x1181   :  { %v1744_v33 = vadd.f32 1.0, %v2178_v7 }
0x1183   :  { %v1746_v9 = vmul.f32 %v1744_v33, %v1730_v8 }
0x1185   :  { %2049 = vmatmul.msk.f32.vlgmr.msrb.gmra.mxu1 %vm901_vm14, %v1746_v9 }
0x11f4   :  { %v1727_v11 = vpop.f32.mrf.mxu2 }
0x11f5   :  { %v1728_v1 = vadd.f32 %v2085_v39, %v1727_v11  ;;  %v1891_v11 = vld [vmem:[%s2921_s18 + $0x18] sm:$0xff] }
0x11f6   :  { %1911 = vmatpush.msrb.mxu3 %v1891_v11 }
0x11f7   :  { %v1733_v12 = vmul.f32 0.044715, %v1728_v1  ;;  %v1731_v61 = vmul.f32 0.5, %v1728_v1 }
0x11f9   :  { %v1735_v13 = vmul.f32 %v1733_v12, %v1728_v1  ;;  %v1889_v12 = vld [vmem:[%s2921_s18 + $0x8] sm:$0xff] }
0x11fb   :  { %v1737_v14 = vmul.f32 %v1735_v13, %v1728_v1  ;;  %v1888_v13 = vld [vmem:[%s2921_s18] sm:$0xff] }
0x11fd   :  { %v1739_v6 = vadd.f32 %v1737_v14, %v1728_v1  ;;  %v1890_v1 = vld [vmem:[%s2921_s18 + $0x10] sm:$0xff]  ;;  %v2089_v14 = vld [vmem:[%s2920_s17] ss:$0 sm:$0xff]  ;;  %s2232_s17 = smov [#allocation2]  }
0x11fe   :  { %1912 = vmatpush.msrb.mxu3 %v1890_v1  ;;  %s1950_s18 = sshll.u32 %s2232_s17, 4  ;;  %s1951_s18 = int_to_ptr.vmem [resolvable:$true] %s1950_s18 }
0x11ff   :  { %v1741_v62 = vmul.f32 0.7978846, %v1739_v6 }
0x1200   :  { %1913 = vmatpush.msrb.mxu3 %v1889_v12 }
0x1201   :  { %2179 = vtanh.f32 %v1741_v62 }
0x1202   :  { %v1785_v17 = vpop.f32.mrf.mxu1  ;;  %1914 = vmatpush.msrb.mxu3 %v1888_v13 }
0x1203   :  { %v1786_v45 = vadd.f32 %v2086_v50, %v1785_v17  ;;  %v2090_v17 = vld [vmem:[%s2922_s19] ss:$0 sm:$0xff] }
0x1205   :  { %v1791_v18 = vadd.f32 %v1786_v45, %v1689_v34 }
0x1207   :  { %v2180_v19 = vpop.eup %2179  ;;  %v1797_v20 = vsel %vm70_vm0, %v1791_v18, 0.0 }
0x1208   :  { %1798 = vadd.xlane.f32.xlu0 %v1797_v20  ;;  %v1745_v52 = vadd.f32 1.0, %v2180_v19 }
0x120a   :  { %v1747_v21 = vmul.f32 %v1745_v52, %v1731_v61 }
0x120c   :  { %2050 = vmatmul.msk.f32.gmra.mxu1 %vm901_vm14, %v1747_v21 }
0x127b   :  { %v1799_v15 = vpop.xlane.xlu0 %1798 }
0x127c   :  { %v1803_v23 = vmul.f32 %v1799_v15, %v2346_v10 }
0x127e   :  { %v1805_v26 = vsub.f32 %v1791_v18, %v1803_v23 }
0x1280   :  { %v1807_v28 = vmul.f32 %v1805_v26, %v1805_v26 }
0x1282   :  { %v1809_v29 = vsel %vm70_vm0, %v1807_v28, 0.0 }
0x1289   :  { %v1788_v22 = vpop.f32.mrf.mxu1 }
0x128a   :  { %v1789_v24 = vadd.f32 %v2086_v50, %v1788_v22 }
0x128c   :  { %v1792_v25 = vadd.f32 %v1789_v24, %v1690_v59 }
0x128e   :  { %v1800_v27 = vsel %vm70_vm0, %v1792_v25, 0.0 }
0x128f   :  { %1801 = vadd.xlane.f32.xlu1 %v1800_v27 }
0x1297   :  { %1810 = vadd.xlane.f32.xlu1 %v1809_v29 }
0x1302   :  { %v1802_v30 = vpop.xlane.xlu1 %1801 }
0x1303   :  { %v1804_v63 = vmul.f32 %v1802_v30, %v2346_v10 }
0x1305   :  { %v1806_v31 = vsub.f32 %v1792_v25, %v1804_v63 }
0x1307   :  { %v1808_v32 = vmul.f32 %v1806_v31, %v1806_v31 }
0x1309   :  { %v1812_v34 = vsel %vm70_vm0, %v1808_v32, 0.0 }
0x130a   :  { %1813 = vadd.xlane.f32.xlu2 %v1812_v34  ;;  %v1811_v35 = vpop.xlane.xlu1 %1810 }
0x130b   :  { %v1815_v36 = vmul.f32 %v1811_v35, %v2346_v10 }
0x130d   :  { %v1817_v37 = vadd.f32 1e-12, %v1815_v36 }
0x130f   :  { %2181 = vrsqrt.f32 %v1817_v37  ;;  %vm1825_vm1 = vweird.f32 %v1817_v37 }
0x1315   :  { %v2182_v41 = vpop.eup %2181 }
0x1316   :  { %v1820_v46 = vmul.f32 %v2182_v41, %v1817_v37  ;;  %vm1826_vm14 = vweird.f32 %v2182_v41 }
0x1317   :  { %vm1827_vm2 = vmor %vm1825_vm1, %vm1826_vm14 }
0x1318   :  { %v1821_v47 = vmul.f32 %v2182_v41, %v1820_v46 }
0x131a   :  { %v1822_v51 = vmul.f32 0.5, %v1821_v47 }
0x131c   :  { %v1823_v16 = vsub.f32 1.5, %v1822_v51 }
0x131e   :  { %v1824_v55 = vmul.f32 %v2182_v41, %v1823_v16 }
0x1320   :  { %v1828_v57 = vsel %vm1827_vm2, %v2182_v41, %v1824_v55 }
0x1321   :  { %v1839_v59 = vmul.f32 %v1828_v57, %v1805_v26 }
0x137d   :  { %v1814_v38 = vpop.xlane.xlu2 %1813 }
0x137e   :  { %v1816_v42 = vmul.f32 %v1814_v38, %v2346_v10  ;;  %v2087_v10 = vld [vmem:[%s2917_s14 + $0x1] ss:$0 sm:$0xff] }
0x137f   :  { %v1844_v3 = vmul.f32 %v2087_v10, %v1839_v59 }
0x1380   :  { %v1818_v48 = vadd.f32 1e-12, %v1816_v42 }
0x1381   :  { %v1849_v8 = vadd.f32 %v2088_v5, %v1844_v3 }
0x1382   :  { %2183 = vrsqrt.f32 %v1818_v48  ;;  %vm1835_vm4 = vweird.f32 %v1818_v48 }
0x1388   :  { %v2184_v53 = vpop.eup %2183 }
0x1389   :  { %v1830_v54 = vmul.f32 %v2184_v53, %v1818_v48  ;;  %vm1836_vm3 = vweird.f32 %v2184_v53 }
0x138a   :  { %vm1837_vm5 = vmor %vm1835_vm4, %vm1836_vm3 }
0x138b   :  { %v1831_v39 = vmul.f32 %v2184_v53, %v1830_v54 }
0x138d   :  { %v1832_v56 = vmul.f32 0.5, %v1831_v39 }
0x138f   :  { %v1833_v60 = vsub.f32 1.5, %v1832_v56 }
0x1391   :  { %v1834_v58 = vmul.f32 %v2184_v53, %v1833_v60 }
0x1393   :  { %v1838_v0 = vsel %vm1837_vm5, %v2184_v53, %v1834_v58 }
0x1394   :  { %v1840_v2 = vmul.f32 %v1838_v0, %v1806_v31 }
0x1396   :  { %v1845_v4 = vmul.f32 %v2087_v10, %v1840_v2 }
0x1398   :  { %v1850_v7 = vadd.f32 %v2088_v5, %v1845_v4 }
0x139a   :  { %v1852_v33 = vrot.slane %v1850_v7, 7 }
0x139c   :  { %v1855_v9 = vsel %vm1854_vm6, %v1849_v8, %v1852_v33 }
0x139d   :  { %2053 = vmatmul.msk.f32.vlgmr.msra.gmra.mxu3 %vm70_vm0, %v1855_v9 }
0x1420   :  { %v1884_v6 = vpop.f32.mrf.mxu3 }
0x1421   :  { %v1885_v50 = vadd.f32 %v2089_v14, %v1884_v6 }
0x1423   :  { %2185 = vtanh.f32 %v1885_v50 }
0x1429   :  { %v2186_v62 = vpop.eup %2185 }
0x142a   :  { %2054 = vmatmul.msk.f32.vlgmr.msrb.gmra.mxu3 %vm70_vm0, %v2186_v62 }
0x14ad   :  { %v1916_v45 = vpop.f32.mrf.mxu3 }
0x14ae   :  { %v1917_v18 = vadd.f32 %v2090_v17, %v1916_v45 }
0x14b0   :  { %v1920_v19 = vsel %vm1919_vm7, %v1917_v18, -inf }
0x14b1   :  { %1921 = vmax.xlane.f32.xlu0 %v1920_v19 }
0x1524   :  { %v1922_v20 = vpop.xlane.xlu0 %1921 }
0x1525   :  { %v1923_v61 = vsub.f32 %v1917_v18, %v1922_v20 }
0x1527   :  { %v1924_v52 = vmul.f32 1.442695, %v1923_v61 }
0x1529   :  { %2187 = vpow2.f32 %v1924_v52 }
0x152f   :  { %v2188_v21 = vpop.eup %2187 }
0x1530   :  { %v1926_v15 = vsel %vm1919_vm7, %v2188_v21, 0.0 }
0x1531   :  { %1927 = vadd.xlane.f32.xlu2 %v1926_v15 }
0x15a4   :  { %v1928_v22 = vpop.xlane.xlu2 %1927 }
0x15a5   :  { %2189 = vrcp.f32 %v1928_v22  ;;  %v1940_v26 = vand.u32 2147483648, %v1928_v22  ;;  %v1938_v28 = vand.u32 2147483647, %v1928_v22  ;;  %vm1934_vm11 = vweird.f32 %v1928_v22 }
0x15a7   :  { %v1941_v30 = vor.u32 1.1754944e-38, %v1940_v26  ;;  %vm1939_vm9 = vcmp.eq.f32.partialorder %v1938_v28, 8.507059e+37 }
0x15ab   :  { %v2190_v23 = vpop.eup %2189 }
0x15ac   :  { %v1930_v24 = vmul.f32 %v2190_v23, %v1928_v22  ;;  %vm1935_vm0 = vweird.f32 %v2190_v23 }
0x15ad   :  { %vm1936_vm8 = vmor %vm1934_vm11, %vm1935_vm0 }
0x15ae   :  { %v1931_v25 = vsub.f32 1.0, %v1930_v24 }
0x15b0   :  { %v1932_v27 = vmul.f32 %v2190_v23, %v1931_v25 }
0x15b2   :  { %v1933_v29 = vadd.f32 %v2190_v23, %v1932_v27 }
0x15b4   :  { %v1937_v63 = vsel %vm1936_vm8, %v2190_v23, %v1933_v29 }
0x15b5   :  { %v1942_v31 = vsel %vm1939_vm9, %v1941_v30, %v1937_v63 }
0x15b6   :  { %v1943_v32 = vmul.f32 %v2188_v21, %v1942_v31 }
0x15b8   :  { %1944 = vst.msk [vmem:[#allocation2] sm:$0x3] %vm1919_vm7, %v1943_v32 }
0x15b9   :  { %1955 = dma.vmem_to_hbm [thread:$0]  %s1951_s18, 32, %s1953_s11, [#allocation3]  }
0x15ba   :  { %2215 = dma.done.wait [#allocation3], 32  }
0x15bb   :  { %2216 = vsyncadd [#allocation3], 4294967264 }
0x15bc   :  { %1960 = vsyncpa [#allocation3], 1 }

</bundles_post_ra>
